<compile_context>
chip_gen: v7x
topology: tpu7x:2x2x1
jax: 0.10.0
libtpu: 0.0.40
codegen_flags: <defaults>
</compile_context>

<pallas_src>
import math
import functools

import jax
import jax.numpy as jnp
from jax import lax
from jax.experimental import pallas as pl
from jax.experimental.pallas import tpu as pltpu

LN_EPS = 1e-5
NEG_INF = -1e30          # additive mask; softmax math stays in f32

TILE_M = 512             # rows (B*T) per tile for GEMM kernels
TILE_N = 512             # output-channel / vocab tile (multiple of 128)
TILE_H = 1024            # MLP hidden (4C) reduction tile
STAT_LANES = 128         # lane-dense width for online-softmax running stats
VMEM_LIMIT = 48 * 1024 * 1024   # explicit scoped-VMEM budget (safe on v7x 64 MiB)


@functools.lru_cache(maxsize=None)
def _tile_q():
    """Attention seq tile: 256 for 256-wide MXUs (v6e/v7x), 128 for older."""
    try:
        kind = jax.devices()[0].device_kind.lower()
    except Exception:
        return 128
    for old in ("v2", "v3", "v4", "v5"):
        if old in kind:
            return 128
    return 256


def _pick_tile(dim, pref, quantum):
    """Largest tile <= pref that divides dim and is a multiple of quantum.

    Small dims (<= pref) use the full extent.  No silent fall-back to a huge
    full-dim block: raise instead so VMEM blow-ups are caught at trace time."""
    if dim <= pref:
        return dim
    t = (pref // quantum) * quantum
    while t >= quantum:
        if dim % t == 0:
            return t
        t -= quantum
    raise ValueError(
        f"dim={dim} has no tile that is a multiple of {quantum} and <= {pref}; "
        f"pad the dimension (e.g. vocab to a multiple of 128).")


def _layernorm_f32(x_f32, g, b):
    mu = jnp.mean(x_f32, axis=-1, keepdims=True)
    xc = x_f32 - mu
    var = jnp.mean(xc * xc, axis=-1, keepdims=True)
    return xc * lax.rsqrt(var + LN_EPS) * g + b


def _compiler_params(dim_sem):
    return pltpu.CompilerParams(dimension_semantics=dim_sem,
                                vmem_limit_bytes=VMEM_LIMIT)


# --------------------- fused LayerNorm + Linear (QKV) ----------------------- #

def _ln_linear_kernel(x_ref, g_ref, b_ref, w_ref, bias_ref, o_ref, xn_ref):
    # LN is computed once per row tile (j == 0) and cached in VMEM scratch.
    @pl.when(pl.program_id(1) == 0)
    def _():
        x = x_ref[...].astype(jnp.float32)
        xn_ref[...] = _layernorm_f32(x, g_ref[...], b_ref[...]).astype(jnp.bfloat16)

    acc = jnp.dot(xn_ref[...], w_ref[...], preferred_element_type=jnp.float32)
    o_ref[...] = (acc + bias_ref[...]).astype(o_ref.dtype)


def ln_linear(x, g, b, w, bias):
    M, K = x.shape
    N = w.shape[1]
    tm = _pick_tile(M, TILE_M, 16)
    tn = _pick_tile(N, TILE_N, 128)
    return pl.pallas_call(
        _ln_linear_kernel,
        grid=(M // tm, N // tn),
        in_specs=[
            pl.BlockSpec((tm, K), lambda i, j: (i, 0)),
            pl.BlockSpec((1, K), lambda i, j: (0, 0)),
            pl.BlockSpec((1, K), lambda i, j: (0, 0)),
            pl.BlockSpec((K, tn), lambda i, j: (0, j)),
            pl.BlockSpec((1, tn), lambda i, j: (0, j)),
        ],
        out_specs=pl.BlockSpec((tm, tn), lambda i, j: (i, j)),
        out_shape=jax.ShapeDtypeStruct((M, N), jnp.bfloat16),
        scratch_shapes=[pltpu.VMEM((tm, K), jnp.bfloat16)],
        compiler_params=_compiler_params(("parallel", "arbitrary")),
    )(x, g, b, w, bias)


# ------------------ Linear + residual (attention c_proj) -------------------- #

def _linear_residual_kernel(x_ref, w_ref, bias_ref, res_ref, o_ref):
    acc = jnp.dot(x_ref[...].astype(jnp.bfloat16), w_ref[...],
                  preferred_element_type=jnp.float32)
    o_ref[...] = (acc + bias_ref[...] +
                  res_ref[...].astype(jnp.float32)).astype(o_ref.dtype)


def linear_residual(x, w, bias, res):
    M, K = x.shape
    N = w.shape[1]
    tm = _pick_tile(M, TILE_M, 16)
    tn = _pick_tile(N, TILE_N, 128)
    return pl.pallas_call(
        _linear_residual_kernel,
        grid=(M // tm, N // tn),
        in_specs=[
            pl.BlockSpec((tm, K), lambda i, j: (i, 0)),
            pl.BlockSpec((K, tn), lambda i, j: (0, j)),
            pl.BlockSpec((1, tn), lambda i, j: (0, j)),
            pl.BlockSpec((tm, tn), lambda i, j: (i, j)),
        ],
        out_specs=pl.BlockSpec((tm, tn), lambda i, j: (i, j)),
        out_shape=jax.ShapeDtypeStruct((M, N), jnp.bfloat16),
        compiler_params=_compiler_params(("parallel", "parallel")),
    )(x, w, bias, res)


# ------- fused LayerNorm + MLP (4C hidden dim tiled as reduction axis) ------ #

def _mlp_kernel(x_ref, g_ref, b_ref, wfc_ref, bfc_ref, wproj_ref, bproj_ref,
                res_ref, o_ref, acc_ref, xn_ref):
    j = pl.program_id(1)

    @pl.when(j == 0)
    def _():
        x = x_ref[...].astype(jnp.float32)
        xn_ref[...] = _layernorm_f32(x, g_ref[...], b_ref[...]).astype(jnp.bfloat16)
        acc_ref[...] = jnp.zeros_like(acc_ref)

    h = jnp.dot(xn_ref[...], wfc_ref[...],
                preferred_element_type=jnp.float32) + bfc_ref[...]
    c = math.sqrt(2.0 / math.pi)
    h = 0.5 * h * (1.0 + jnp.tanh(c * (h + 0.044715 * (h * h * h))))  # gelu(tanh)
    acc_ref[...] += jnp.dot(h.astype(jnp.bfloat16), wproj_ref[...],
                            preferred_element_type=jnp.float32)

    @pl.when(j == pl.num_programs(1) - 1)
    def _():
        o_ref[...] = (acc_ref[...] + bproj_ref[...] +
                      res_ref[...].astype(jnp.float32)).astype(o_ref.dtype)


def mlp(x, g, b, w_fc, b_fc, w_proj, b_proj, res):
    M, C = x.shape
    H = w_fc.shape[1]
    tm = _pick_tile(M, TILE_M, 16)
    th = _pick_tile(H, TILE_H, 128)
    return pl.pallas_call(
        _mlp_kernel,
        grid=(M // tm, H // th),
        in_specs=[
            pl.BlockSpec((tm, C), lambda i, j: (i, 0)),
            pl.BlockSpec((1, C), lambda i, j: (0, 0)),
            pl.BlockSpec((1, C), lambda i, j: (0, 0)),
            pl.BlockSpec((C, th), lambda i, j: (0, j)),
            pl.BlockSpec((1, th), lambda i, j: (0, j)),
            pl.BlockSpec((th, C), lambda i, j: (j, 0)),
            pl.BlockSpec((1, C), lambda i, j: (0, 0)),
            pl.BlockSpec((tm, C), lambda i, j: (i, 0)),
        ],
        out_specs=pl.BlockSpec((tm, C), lambda i, j: (i, 0)),
        out_shape=jax.ShapeDtypeStruct((M, C), jnp.bfloat16),
        scratch_shapes=[pltpu.VMEM((tm, C), jnp.float32),    # c_proj accumulator
                        pltpu.VMEM((tm, C), jnp.bfloat16)],  # cached ln_2(x)
        compiler_params=_compiler_params(("parallel", "arbitrary")),
    )(x, g, b, w_fc, b_fc, w_proj, b_proj, res)


# -------------- fused final LayerNorm + lm_head (tied weights) -------------- #

def _ln_lm_head_kernel(x_ref, g_ref, b_ref, wte_ref, o_ref, xn_ref):
    @pl.when(pl.program_id(1) == 0)
    def _():
        x = x_ref[...].astype(jnp.float32)
        xn_ref[...] = _layernorm_f32(x, g_ref[...], b_ref[...]).astype(jnp.bfloat16)

    # x_ln @ wte.T with wte kept in its native [vocab, C] layout.
    o_ref[...] = lax.dot_general(
        xn_ref[...], wte_ref[...],
        (((1,), (1,)), ((), ())),
        preferred_element_type=jnp.float32).astype(o_ref.dtype)


def ln_lm_head(x, g, b, wte):
    M, C = x.shape
    V = wte.shape[0]
    tm = _pick_tile(M, TILE_M, 16)
    tv = _pick_tile(V, TILE_N, 128)
    return pl.pallas_call(
        _ln_lm_head_kernel,
        grid=(M // tm, V // tv),
        in_specs=[
            pl.BlockSpec((tm, C), lambda i, j: (i, 0)),
            pl.BlockSpec((1, C), lambda i, j: (0, 0)),
            pl.BlockSpec((1, C), lambda i, j: (0, 0)),
            pl.BlockSpec((tv, C), lambda i, j: (j, 0)),   # native [vocab, C]
        ],
        out_specs=pl.BlockSpec((tm, tv), lambda i, j: (i, j)),
        # bf16 logits: halves the dominant HBM writeback of the forward pass.
        out_shape=jax.ShapeDtypeStruct((M, V), jnp.bfloat16),
        scratch_shapes=[pltpu.VMEM((tm, C), jnp.bfloat16)],  # cached ln_f(x)
        compiler_params=_compiler_params(("parallel", "arbitrary")),
    )(x, g, b, wte)
    # TODO(synk): fuse log-softmax / cross-entropy (targets path) so full
    # logits never hit HBM; forward currently returns logits only.


# ----------------------- flash-style causal attention ----------------------- #
# Consumes the packed [B, T, 3C] qkv tensor; q/k/v are channel blocks 0/1/2.

def _flash_attn_kernel(q_ref, k_ref, v_ref, o_ref, m_ref, l_ref, acc_ref,
                       *, n_head, head_dim):
    qi = pl.program_id(1)
    kv = pl.program_id(2)
    n_kv = pl.num_programs(2)

    @pl.when(kv == 0)
    def _():
        m_ref[...] = jnp.full(m_ref.shape, -jnp.inf, m_ref.dtype)
        l_ref[...] = jnp.zeros_like(l_ref)
        acc_ref[...] = jnp.zeros_like(acc_ref)

    scale = 1.0 / math.sqrt(head_dim)

    def process(masked):
        # scale q once per block (exact for head_dim a power of four, e.g. 64)
        q = (q_ref[0].astype(jnp.float32) * scale).astype(jnp.bfloat16)  # [tq, C]
        k = k_ref[0]                                                     # [tk, C]
        v = v_ref[0]                                                     # [tk, C]
        tq, tk = q.shape[0], k.shape[0]
        if masked:
            # diagonal block only (qi == kv, tq == tk): local row/col mask.
            row = lax.broadcasted_iota(jnp.int32, (tq, tk), 0)
            col = lax.broadcasted_iota(jnp.int32, (tq, tk), 1)
            causal = col <= row
        for h in range(n_head):
            sl = slice(h * head_dim, (h + 1) * head_dim)
            s = lax.dot_general(q[:, sl], k[:, sl], (((1,), (1,)), ((), ())),
                                preferred_element_type=jnp.float32)      # [tq, tk]
            if masked:
                s = jnp.where(causal, s, NEG_INF)
            m_prev = m_ref[h]                                            # [tq, 128]
            m_cur = jnp.max(s, axis=-1, keepdims=True)                   # [tq, 1]
            m_next = jnp.maximum(m_prev, m_cur)                          # [tq, 128]
            alpha = jnp.exp(m_prev - m_next)                             # [tq, 128]
            p = jnp.exp(s - m_next[:, 0:1])                              # [tq, tk]
            l_ref[h] = alpha * l_ref[h] + jnp.sum(p, axis=-1, keepdims=True)
            m_ref[h] = m_next
            acc_ref[h] = alpha[:, 0:1] * acc_ref[h] + jnp.dot(
                p.astype(jnp.bfloat16), v[:, sl],
                preferred_element_type=jnp.float32)

    @pl.when(kv < qi)          # fully-unmasked kv blocks: no mask math
    def _():
        process(False)

    @pl.when(kv == qi)         # diagonal block: apply causal mask
    def _():
        process(True)

    @pl.when(kv == n_kv - 1)   # finalize once per q tile; output DMA is full-C
    def _():
        for h in range(n_head):
            sl = slice(h * head_dim, (h + 1) * head_dim)
            l_h = l_ref[h]
            inv_l = pl.reciprocal(l_h[:, 0:1], approx=True)
            o_ref[0, :, sl] = (acc_ref[h] * inv_l).astype(o_ref.dtype)


def causal_attention(qkv, *, n_head):
    """qkv: [B, T, 3C] packed (q | k | v along channels). Returns [B, T, C]."""
    B, T, C3 = qkv.shape
    C = C3 // 3
    head_dim = C // n_head
    tq = _pick_tile(T, _tile_q(), 16)          # tq == tk
    nh = n_head
    kernel = functools.partial(_flash_attn_kernel, n_head=n_head,
                               head_dim=head_dim)
    # Channel block index selects q (0), k (1) or v (2) from the packed array.
    # K/V block index is clamped to min(qi, kv): fully-masked future blocks
    # keep the same block index, so Pallas never re-fetches them.
    q_spec = pl.BlockSpec((1, tq, C), lambda b, i, j: (b, i, 0))
    k_spec = pl.BlockSpec((1, tq, C), lambda b, i, j: (b, jnp.minimum(i, j), 1))
    v_spec = pl.BlockSpec((1, tq, C), lambda b, i, j: (b, jnp.minimum(i, j), 2))
    o_spec = pl.BlockSpec((1, tq, C), lambda b, i, j: (b, i, 0))
    return pl.pallas_call(
        kernel,
        grid=(B, T // tq, T // tq),
        in_specs=[q_spec, k_spec, v_spec],
        out_specs=o_spec,
        out_shape=jax.ShapeDtypeStruct((B, T, C), qkv.dtype),
        scratch_shapes=[
            pltpu.VMEM((nh, tq, STAT_LANES), jnp.float32),   # running max m
            pltpu.VMEM((nh, tq, STAT_LANES), jnp.float32),   # running sum l
            pltpu.VMEM((nh, tq, head_dim), jnp.float32),     # output accumulator
        ],
        compiler_params=_compiler_params(("parallel", "parallel", "arbitrary")),
    )(qkv, qkv, qkv)


# --------------------------- parameter construction ------------------------- #

def init_params(key, *, n_layer, n_head, n_embd, vocab_size, block_size):
    std = 0.02
    proj_std = 0.02 * (2 * n_layer) ** -0.5   # NANOGPT_SCALE_INIT
    C = n_embd
    # Pad the vocab to a multiple of 128 (nanoGPT uses 50304) so lm_head tiles
    # stay lane-dense and never fall back to a giant full-vocab block.
    vocab_padded = ((vocab_size + 127) // 128) * 128
    kit = iter(jax.random.split(key, 2 + 4 * n_layer))

    def nrm(shape, s):
        return (s * jax.random.normal(next(kit), shape, jnp.float32)
                ).astype(jnp.bfloat16)

    params = {
        "wte": nrm((vocab_padded, C), std),    # tied with lm_head
        "wpe": nrm((block_size, C), std),
        "lnf_g": jnp.ones((1, C), jnp.float32),
        "lnf_b": jnp.zeros((1, C), jnp.float32),
        "blocks": [],
    }
    for _ in range(n_layer):
        params["blocks"].append({
            "ln1_g": jnp.ones((1, C), jnp.float32),
            "ln1_b": jnp.zeros((1, C), jnp.float32),
            "w_attn": nrm((C, 3 * C), std),
            "b_attn": jnp.zeros((1, 3 * C), jnp.float32),
            "w_attn_proj": nrm((C, C), proj_std),
            "b_attn_proj": jnp.zeros((1, C), jnp.float32),
            "ln2_g": jnp.ones((1, C), jnp.float32),
            "ln2_b": jnp.zeros((1, C), jnp.float32),
            "w_fc": nrm((C, 4 * C), std),
            "b_fc": jnp.zeros((1, 4 * C), jnp.float32),
            "w_proj": nrm((4 * C, C), proj_std),
            "b_proj": jnp.zeros((1, C), jnp.float32),
        })
    return params


# ---------------------------------- forward --------------------------------- #

def gpt_forward(params, idx, *, n_head, n_embd, vocab_size):
    B, T = idx.shape
    C = n_embd

    tok_emb = jnp.take(params["wte"], idx, axis=0)         # [B, T, C] bf16
    pos_emb = params["wpe"][:T][None, :, :]                 # [1, T, C] bf16
    x = (tok_emb + pos_emb).astype(jnp.bfloat16)

    for blk in params["blocks"]:
        # --- attention sub-block: x = x + c_proj(attn(ln_1(x)))
        xf = x.reshape(B * T, C)
        qkv = ln_linear(xf, blk["ln1_g"], blk["ln1_b"],
                        blk["w_attn"], blk["b_attn"])       # [B*T, 3C]  (LN fused)
        # no jnp.split: attention reads q/k/v straight out of the packed qkv
        y = causal_attention(qkv.reshape(B, T, 3 * C), n_head=n_head)  # [B, T, C]
        x = linear_residual(y.reshape(B * T, C), blk["w_attn_proj"],
                            blk["b_attn_proj"], xf).reshape(B, T, C)

        # --- MLP sub-block: x = x + c_proj(gelu(c_fc(ln_2(x))))  (fully fused)
        xf = x.reshape(B * T, C)
        x = mlp(xf, blk["ln2_g"], blk["ln2_b"], blk["w_fc"], blk["b_fc"],
                blk["w_proj"], blk["b_proj"], xf).reshape(B, T, C)

    logits = ln_lm_head(x.reshape(B * T, C), params["lnf_g"], params["lnf_b"],
                        params["wte"])                      # [B*T, V_pad] bf16
    logits = logits.reshape(B, T, -1)
    if logits.shape[-1] != vocab_size:                      # drop vocab padding
        logits = logits[..., :vocab_size]
    return logits
    # TODO(synk): cross-entropy loss (targets path) not implemented.


# ------------------------------------ main ----------------------------------- #

if __name__ == "__main__":
    # Small GPTConfig-like settings.  n_embd=128 keeps every channel block a
    # multiple of 128 lanes; head_dim=64 matches the real GPT-2-small config;
    # vocab_size=80 exercises the pad-to-128 lm_head path.
    n_layer, n_head, n_embd = 2, 2, 128
    vocab_size, block_size = 80, 16
    B, T = 2, 16

    key = jax.random.PRNGKey(0)
    pkey, dkey = jax.random.split(key)
    params = init_params(pkey, n_layer=n_layer, n_head=n_head, n_embd=n_embd,
                         vocab_size=vocab_size, block_size=block_size)
    idx = jax.random.randint(dkey, (B, T), 0, vocab_size, dtype=jnp.int32)

    fwd = jax.jit(functools.partial(gpt_forward, n_head=n_head,
                                    n_embd=n_embd, vocab_size=vocab_size))
    logits = fwd(params, idx)
    jax.block_until_ready(logits)
    assert logits.shape == (B, T, vocab_size)
    assert bool(jnp.all(jnp.isfinite(logits.astype(jnp.float32))))
    print("KERNEL_OK")
</pallas_src>

<mosaic_0001>
module attributes {stable_mosaic.version = 11 : i64} {
  func.func @_linear_residual_kernel(%arg0: i32, %arg1: i32, %arg2: memref<32x128xbf16, #tpu.memory_space<vmem>>, %arg3: memref<128x128xbf16, #tpu.memory_space<vmem>>, %arg4: memref<1x128xf32, #tpu.memory_space<vmem>>, %arg5: memref<32x128xbf16, #tpu.memory_space<vmem>>, %arg6: memref<32x128xbf16, #tpu.memory_space<vmem>>) attributes {dimension_semantics = [#tpu.dimension_semantics<parallel>, #tpu.dimension_semantics<parallel>], iteration_bounds = array<i64: 1, 1>, scalar_prefetch = 0 : i64, scratch_operands = 0 : i64, tpu.core_type = #tpu.core_type<tc>, window_params = [{transform_indices = @transform_0, window_bounds = array<i64: 32, 128>}, {transform_indices = @transform_1, window_bounds = array<i64: 128, 128>}, {transform_indices = @transform_2, window_bounds = array<i64: 1, 128>}, {transform_indices = @transform_3, window_bounds = array<i64: 32, 128>}, {transform_indices = @transform_4, window_bounds = array<i64: 32, 128>}]} {
    %c0 = arith.constant 0 : index
    %c0_0 = arith.constant 0 : index
    %0 = vector.load %arg2[%c0, %c0_0] : memref<32x128xbf16, #tpu.memory_space<vmem>>, vector<32x128xbf16>
    %c0_1 = arith.constant 0 : index
    %c0_2 = arith.constant 0 : index
    %1 = vector.load %arg3[%c0_1, %c0_2] : memref<128x128xbf16, #tpu.memory_space<vmem>>, vector<128x128xbf16>
    %cst = arith.constant dense<0.000000e+00> : vector<32x128xf32>
    %2 = tpu.matmul %0, %1, %cst {dimension_numbers = #tpu.dot_dimension_numbers<[1], [0], [0], [1], [0, 0, 1, 1], [], []>} : vector<32x128xbf16>, vector<128x128xbf16>, vector<32x128xf32> -> vector<32x128xf32>
    %c0_3 = arith.constant 0 : index
    %c0_4 = arith.constant 0 : index
    %3 = vector.load %arg4[%c0_3, %c0_4] : memref<1x128xf32, #tpu.memory_space<vmem>>, vector<1x128xf32>
    %4 = vector.broadcast %3 : vector<1x128xf32> to vector<32x128xf32>
    %5 = arith.addf %2, %4 : vector<32x128xf32>
    %c0_5 = arith.constant 0 : index
    %c0_6 = arith.constant 0 : index
    %6 = vector.load %arg5[%c0_5, %c0_6] : memref<32x128xbf16, #tpu.memory_space<vmem>>, vector<32x128xbf16>
    %7 = arith.extf %6 : vector<32x128xbf16> to vector<32x128xf32>
    %8 = arith.addf %5, %7 : vector<32x128xf32>
    %9 = arith.truncf %8 : vector<32x128xf32> to vector<32x128xbf16>
    %c0_7 = arith.constant 0 : index
    %c0_8 = arith.constant 0 : index
    %10 = vector.load %arg6[%c0_7, %c0_8] : memref<32x128xbf16, #tpu.memory_space<vmem>>, vector<32x128xbf16>
    tpu.vector_store %arg6[%c0_7, %c0_8], %9 {strides = array<i32>} : memref<32x128xbf16, #tpu.memory_space<vmem>>, vector<32x128xbf16>,
    return
  }
  func.func @transform_0(%arg0: i32, %arg1: i32) -> (i32, i32) {
    %c0_i32 = arith.constant 0 : i32
    %c0_i32_0 = arith.constant 0 : i32
    return %arg0, %c0_i32 : i32, i32
  }
  func.func @transform_1(%arg0: i32, %arg1: i32) -> (i32, i32) {
    %c0_i32 = arith.constant 0 : i32
    %c0_i32_0 = arith.constant 0 : i32
    return %c0_i32, %arg1 : i32, i32
  }
  func.func @transform_2(%arg0: i32, %arg1: i32) -> (i32, i32) {
    %c0_i32 = arith.constant 0 : i32
    %c0_i32_0 = arith.constant 0 : i32
    return %c0_i32, %arg1 : i32, i32
  }
  func.func @transform_3(%arg0: i32, %arg1: i32) -> (i32, i32) {
    %c0_i32 = arith.constant 0 : i32
    return %arg0, %arg1 : i32, i32
  }
  func.func @transform_4(%arg0: i32, %arg1: i32) -> (i32, i32) {
    %c0_i32 = arith.constant 0 : i32
    return %arg0, %arg1 : i32, i32
  }
}

module attributes {stable_mosaic.version = 11 : i64} {
  func.func @_ln_linear_kernel(%arg0: i32, %arg1: i32, %arg2: memref<32x128xbf16, #tpu.memory_space<vmem>>, %arg3: memref<1x128xf32, #tpu.memory_space<vmem>>, %arg4: memref<1x128xf32, #tpu.memory_space<vmem>>, %arg5: memref<128x384xbf16, #tpu.memory_space<vmem>>, %arg6: memref<1x384xf32, #tpu.memory_space<vmem>>, %arg7: memref<32x384xbf16, #tpu.memory_space<vmem>>, %arg8: memref<32x128xbf16, #tpu.memory_space<vmem>>) attributes {dimension_semantics = [#tpu.dimension_semantics<parallel>, #tpu.dimension_semantics<arbitrary>], iteration_bounds = array<i64: 1, 1>, scalar_prefetch = 0 : i64, scratch_operands = 1 : i64, tpu.core_type = #tpu.core_type<tc>, window_params = [{transform_indices = @transform_0, window_bounds = array<i64: 32, 128>}, {pipeline_mode = #tpu.pipeline_mode<synchronous>, transform_indices = @transform_1, window_bounds = array<i64: 1, 128>}, {pipeline_mode = #tpu.pipeline_mode<synchronous>, transform_indices = @transform_2, window_bounds = array<i64: 1, 128>}, {transform_indices = @transform_3, window_bounds = array<i64: 128, 384>}, {transform_indices = @transform_4, window_bounds = array<i64: 1, 384>}, {transform_indices = @transform_5, window_bounds = array<i64: 32, 384>}]} {
    %c0_i32 = arith.constant 0 : i32
    %0 = arith.cmpi eq, %arg1, %c0_i32 : i32
    %1 = arith.extui %0 : i1 to i32
    %c0_i32_0 = arith.constant 0 : i32
    %2 = arith.cmpi ne, %1, %c0_i32_0 : i32
    scf.if %2 {
      %c0_8 = arith.constant 0 : index
      %c0_9 = arith.constant 0 : index
      %11 = vector.load %arg2[%c0_8, %c0_9] : memref<32x128xbf16, #tpu.memory_space<vmem>>, vector<32x128xbf16>
      %12 = arith.extf %11 : vector<32x128xbf16> to vector<32x128xf32>
      %c0_10 = arith.constant 0 : index
      %c0_11 = arith.constant 0 : index
      %13 = vector.load %arg3[%c0_10, %c0_11] : memref<1x128xf32, #tpu.memory_space<vmem>>, vector<1x128xf32>
      %c0_12 = arith.constant 0 : index
      %c0_13 = arith.constant 0 : index
      %14 = vector.load %arg4[%c0_12, %c0_13] : memref<1x128xf32, #tpu.memory_space<vmem>>, vector<1x128xf32>
      %cst_14 = arith.constant dense<0.000000e+00> : vector<32xf32>
      %15 = vector.multi_reduction <add>, %12, %cst_14 [1] : vector<32x128xf32> to vector<32xf32>
      %16 = vector.shape_cast %15 : vector<32xf32> to vector<32x1xf32>
      %cst_15 = arith.constant 1.280000e+02 : f32
      %17 = vector.broadcast %cst_15 : f32 to vector<32x1xf32>
      %18 = arith.divf %16, %17 : vector<32x1xf32>
      %19 = vector.broadcast %18 : vector<32x1xf32> to vector<32x128xf32>
      %20 = arith.subf %12, %19 : vector<32x128xf32>
      %21 = arith.mulf %20, %20 : vector<32x128xf32>
      %cst_16 = arith.constant dense<0.000000e+00> : vector<32xf32>
      %22 = vector.multi_reduction <add>, %21, %cst_16 [1] : vector<32x128xf32> to vector<32xf32>
      %23 = vector.shape_cast %22 : vector<32xf32> to vector<32x1xf32>
      %cst_17 = arith.constant 1.280000e+02 : f32
      %24 = vector.broadcast %cst_17 : f32 to vector<32x1xf32>
      %25 = arith.divf %23, %24 : vector<32x1xf32>
      %cst_18 = arith.constant 9.99999974E-6 : f32
      %26 = vector.broadcast %cst_18 : f32 to vector<32x1xf32>
      %27 = arith.addf %25, %26 : vector<32x1xf32>
      %28 = math.rsqrt %27 : vector<32x1xf32>
      %29 = vector.broadcast %28 : vector<32x1xf32> to vector<32x128xf32>
      %30 = arith.mulf %20, %29 : vector<32x128xf32>
      %31 = vector.broadcast %13 : vector<1x128xf32> to vector<32x128xf32>
      %32 = arith.mulf %30, %31 : vector<32x128xf32>
      %33 = vector.broadcast %14 : vector<1x128xf32> to vector<32x128xf32>
      %34 = arith.addf %32, %33 : vector<32x128xf32>
      %35 = arith.truncf %34 : vector<32x128xf32> to vector<32x128xbf16>
      %c0_19 = arith.constant 0 : index
      %c0_20 = arith.constant 0 : index
      %36 = vector.load %arg8[%c0_19, %c0_20] : memref<32x128xbf16, #tpu.memory_space<vmem>>, vector<32x128xbf16>
      tpu.vector_store %arg8[%c0_19, %c0_20], %35 {strides = array<i32>} : memref<32x128xbf16, #tpu.memory_space<vmem>>, vector<32x128xbf16>,
    } else {
    }
    %c0 = arith.constant 0 : index
    %c0_1 = arith.constant 0 : index
    %3 = vector.load %arg8[%c0, %c0_1] : memref<32x128xbf16, #tpu.memory_space<vmem>>, vector<32x128xbf16>
    %c0_2 = arith.constant 0 : index
    %c0_3 = arith.constant 0 : index
    %4 = vector.load %arg5[%c0_2, %c0_3] : memref<128x384xbf16, #tpu.memory_space<vmem>>, vector<128x384xbf16>
    %cst = arith.constant dense<0.000000e+00> : vector<32x384xf32>
    %5 = tpu.matmul %3, %4, %cst {dimension_numbers = #tpu.dot_dimension_numbers<[1], [0], [0], [1], [0, 0, 1, 1], [], []>} : vector<32x128xbf16>, vector<128x384xbf16>, vector<32x384xf32> -> vector<32x384xf32>
    %c0_4 = arith.constant 0 : index
    %c0_5 = arith.constant 0 : index
    %6 = vector.load %arg6[%c0_4, %c0_5] : memref<1x384xf32, #tpu.memory_space<vmem>>, vector<1x384xf32>
    %7 = vector.broadcast %6 : vector<1x384xf32> to vector<32x384xf32>
    %8 = arith.addf %5, %7 : vector<32x384xf32>
    %9 = arith.truncf %8 : vector<32x384xf32> to vector<32x384xbf16>
    %c0_6 = arith.constant 0 : index
    %c0_7 = arith.constant 0 : index
    %10 = vector.load %arg7[%c0_6, %c0_7] : memref<32x384xbf16, #tpu.memory_space<vmem>>, vector<32x384xbf16>
    tpu.vector_store %arg7[%c0_6, %c0_7], %9 {strides = array<i32>} : memref<32x384xbf16, #tpu.memory_space<vmem>>, vector<32x384xbf16>,
    return
  }
  func.func @transform_0(%arg0: i32, %arg1: i32) -> (i32, i32) {
    %c0_i32 = arith.constant 0 : i32
    %c0_i32_0 = arith.constant 0 : i32
    return %arg0, %c0_i32 : i32, i32
  }
  func.func @transform_1(%arg0: i32, %arg1: i32) -> (i32, i32) {
    %c0_i32 = arith.constant 0 : i32
    %c0_i32_0 = arith.constant 0 : i32
    %c0_i32_1 = arith.constant 0 : i32
    return %c0_i32, %c0_i32_0 : i32, i32
  }
  func.func @transform_2(%arg0: i32, %arg1: i32) -> (i32, i32) {
    %c0_i32 = arith.constant 0 : i32
    %c0_i32_0 = arith.constant 0 : i32
    %c0_i32_1 = arith.constant 0 : i32
    return %c0_i32, %c0_i32_0 : i32, i32
  }
  func.func @transform_3(%arg0: i32, %arg1: i32) -> (i32, i32) {
    %c0_i32 = arith.constant 0 : i32
    %c0_i32_0 = arith.constant 0 : i32
    return %c0_i32, %arg1 : i32, i32
  }
  func.func @transform_4(%arg0: i32, %arg1: i32) -> (i32, i32) {
    %c0_i32 = arith.constant 0 : i32
    %c0_i32_0 = arith.constant 0 : i32
    return %c0_i32, %arg1 : i32, i32
  }
  func.func @transform_5(%arg0: i32, %arg1: i32) -> (i32, i32) {
    %c0_i32 = arith.constant 0 : i32
    return %arg0, %arg1 : i32, i32
  }
}

module attributes {stable_mosaic.version = 11 : i64} {
  func.func @_mlp_kernel(%arg0: i32, %arg1: i32, %arg2: memref<32x128xbf16, #tpu.memory_space<vmem>>, %arg3: memref<1x128xf32, #tpu.memory_space<vmem>>, %arg4: memref<1x128xf32, #tpu.memory_space<vmem>>, %arg5: memref<128x512xbf16, #tpu.memory_space<vmem>>, %arg6: memref<1x512xf32, #tpu.memory_space<vmem>>, %arg7: memref<512x128xbf16, #tpu.memory_space<vmem>>, %arg8: memref<1x128xf32, #tpu.memory_space<vmem>>, %arg9: memref<32x128xbf16, #tpu.memory_space<vmem>>, %arg10: memref<32x128xbf16, #tpu.memory_space<vmem>>, %arg11: memref<32x128xf32, #tpu.memory_space<vmem>>, %arg12: memref<32x128xbf16, #tpu.memory_space<vmem>>) attributes {dimension_semantics = [#tpu.dimension_semantics<parallel>, #tpu.dimension_semantics<arbitrary>], iteration_bounds = array<i64: 1, 1>, scalar_prefetch = 0 : i64, scratch_operands = 2 : i64, tpu.core_type = #tpu.core_type<tc>, window_params = [{transform_indices = @transform_0, window_bounds = array<i64: 32, 128>}, {pipeline_mode = #tpu.pipeline_mode<synchronous>, transform_indices = @transform_1, window_bounds = array<i64: 1, 128>}, {pipeline_mode = #tpu.pipeline_mode<synchronous>, transform_indices = @transform_2, window_bounds = array<i64: 1, 128>}, {transform_indices = @transform_3, window_bounds = array<i64: 128, 512>}, {transform_indices = @transform_4, window_bounds = array<i64: 1, 512>}, {transform_indices = @transform_5, window_bounds = array<i64: 512, 128>}, {pipeline_mode = #tpu.pipeline_mode<synchronous>, transform_indices = @transform_6, window_bounds = array<i64: 1, 128>}, {transform_indices = @transform_7, window_bounds = array<i64: 32, 128>}, {transform_indices = @transform_8, window_bounds = array<i64: 32, 128>}]} {
    %c0_i32 = arith.constant 0 : i32
    %0 = arith.cmpi eq, %arg1, %c0_i32 : i32
    %1 = arith.extui %0 : i1 to i32
    %c0_i32_0 = arith.constant 0 : i32
    %2 = arith.cmpi ne, %1, %c0_i32_0 : i32
    scf.if %2 {
      %c0_19 = arith.constant 0 : index
      %c0_20 = arith.constant 0 : index
      %31 = vector.load %arg2[%c0_19, %c0_20] : memref<32x128xbf16, #tpu.memory_space<vmem>>, vector<32x128xbf16>
      %32 = arith.extf %31 : vector<32x128xbf16> to vector<32x128xf32>
      %c0_21 = arith.constant 0 : index
      %c0_22 = arith.constant 0 : index
      %33 = vector.load %arg3[%c0_21, %c0_22] : memref<1x128xf32, #tpu.memory_space<vmem>>, vector<1x128xf32>
      %c0_23 = arith.constant 0 : index
      %c0_24 = arith.constant 0 : index
      %34 = vector.load %arg4[%c0_23, %c0_24] : memref<1x128xf32, #tpu.memory_space<vmem>>, vector<1x128xf32>
      %cst_25 = arith.constant dense<0.000000e+00> : vector<32xf32>
      %35 = vector.multi_reduction <add>, %32, %cst_25 [1] : vector<32x128xf32> to vector<32xf32>
      %36 = vector.shape_cast %35 : vector<32xf32> to vector<32x1xf32>
      %cst_26 = arith.constant 1.280000e+02 : f32
      %37 = vector.broadcast %cst_26 : f32 to vector<32x1xf32>
      %38 = arith.divf %36, %37 : vector<32x1xf32>
      %39 = vector.broadcast %38 : vector<32x1xf32> to vector<32x128xf32>
      %40 = arith.subf %32, %39 : vector<32x128xf32>
      %41 = arith.mulf %40, %40 : vector<32x128xf32>
      %cst_27 = arith.constant dense<0.000000e+00> : vector<32xf32>
      %42 = vector.multi_reduction <add>, %41, %cst_27 [1] : vector<32x128xf32> to vector<32xf32>
      %43 = vector.shape_cast %42 : vector<32xf32> to vector<32x1xf32>
      %cst_28 = arith.constant 1.280000e+02 : f32
      %44 = vector.broadcast %cst_28 : f32 to vector<32x1xf32>
      %45 = arith.divf %43, %44 : vector<32x1xf32>
      %cst_29 = arith.constant 9.99999974E-6 : f32
      %46 = vector.broadcast %cst_29 : f32 to vector<32x1xf32>
      %47 = arith.addf %45, %46 : vector<32x1xf32>
      %48 = math.rsqrt %47 : vector<32x1xf32>
      %49 = vector.broadcast %48 : vector<32x1xf32> to vector<32x128xf32>
      %50 = arith.mulf %40, %49 : vector<32x128xf32>
      %51 = vector.broadcast %33 : vector<1x128xf32> to vector<32x128xf32>
      %52 = arith.mulf %50, %51 : vector<32x128xf32>
      %53 = vector.broadcast %34 : vector<1x128xf32> to vector<32x128xf32>
      %54 = arith.addf %52, %53 : vector<32x128xf32>
      %55 = arith.truncf %54 : vector<32x128xf32> to vector<32x128xbf16>
      %c0_30 = arith.constant 0 : index
      %c0_31 = arith.constant 0 : index
      %56 = vector.load %arg12[%c0_30, %c0_31] : memref<32x128xbf16, #tpu.memory_space<vmem>>, vector<32x128xbf16>
      tpu.vector_store %arg12[%c0_30, %c0_31], %55 {strides = array<i32>} : memref<32x128xbf16, #tpu.memory_space<vmem>>, vector<32x128xbf16>,
      %cst_32 = arith.constant 0.000000e+00 : f32
      %57 = vector.broadcast %cst_32 : f32 to vector<32x128xf32>
      %c0_33 = arith.constant 0 : index
      %c0_34 = arith.constant 0 : index
      %58 = vector.load %arg11[%c0_33, %c0_34] : memref<32x128xf32, #tpu.memory_space<vmem>>, vector<32x128xf32>
      tpu.vector_store %arg11[%c0_33, %c0_34], %57 {strides = array<i32>} : memref<32x128xf32, #tpu.memory_space<vmem>>, vector<32x128xf32>,
    } else {
    }
    %c0 = arith.constant 0 : index
    %c0_1 = arith.constant 0 : index
    %3 = vector.load %arg12[%c0, %c0_1] : memref<32x128xbf16, #tpu.memory_space<vmem>>, vector<32x128xbf16>
    %c0_2 = arith.constant 0 : index
    %c0_3 = arith.constant 0 : index
    %4 = vector.load %arg5[%c0_2, %c0_3] : memref<128x512xbf16, #tpu.memory_space<vmem>>, vector<128x512xbf16>
    %cst = arith.constant dense<0.000000e+00> : vector<32x512xf32>
    %5 = tpu.matmul %3, %4, %cst {dimension_numbers = #tpu.dot_dimension_numbers<[1], [0], [0], [1], [0, 0, 1, 1], [], []>} : vector<32x128xbf16>, vector<128x512xbf16>, vector<32x512xf32> -> vector<32x512xf32>
    %c0_4 = arith.constant 0 : index
    %c0_5 = arith.constant 0 : index
    %6 = vector.load %arg6[%c0_4, %c0_5] : memref<1x512xf32, #tpu.memory_space<vmem>>, vector<1x512xf32>
    %7 = vector.broadcast %6 : vector<1x512xf32> to vector<32x512xf32>
    %8 = arith.addf %5, %7 : vector<32x512xf32>
    %cst_6 = arith.constant 5.000000e-01 : f32
    %9 = vector.broadcast %cst_6 : f32 to vector<32x512xf32>
    %10 = arith.mulf %9, %8 : vector<32x512xf32>
    %11 = arith.mulf %8, %8 : vector<32x512xf32>
    %12 = arith.mulf %11, %8 : vector<32x512xf32>
    %cst_7 = arith.constant 4.471500e-02 : f32
    %13 = vector.broadcast %cst_7 : f32 to vector<32x512xf32>
    %14 = arith.mulf %13, %12 : vector<32x512xf32>
    %15 = arith.addf %8, %14 : vector<32x512xf32>
    %cst_8 = arith.constant 0.797884583 : f32
    %16 = vector.broadcast %cst_8 : f32 to vector<32x512xf32>
    %17 = arith.mulf %16, %15 : vector<32x512xf32>
    %18 = math.tanh %17 : vector<32x512xf32>
    %cst_9 = arith.constant 1.000000e+00 : f32
    %19 = vector.broadcast %cst_9 : f32 to vector<32x512xf32>
    %20 = arith.addf %19, %18 : vector<32x512xf32>
    %21 = arith.mulf %10, %20 : vector<32x512xf32>
    %c0_10 = arith.constant 0 : index
    %c0_11 = arith.constant 0 : index
    %22 = vector.load %arg11[%c0_10, %c0_11] : memref<32x128xf32, #tpu.memory_space<vmem>>, vector<32x128xf32>
    %23 = arith.truncf %21 : vector<32x512xf32> to vector<32x512xbf16>
    %c0_12 = arith.constant 0 : index
    %c0_13 = arith.constant 0 : index
    %24 = vector.load %arg7[%c0_12, %c0_13] : memref<512x128xbf16, #tpu.memory_space<vmem>>, vector<512x128xbf16>
    %cst_14 = arith.constant dense<0.000000e+00> : vector<32x128xf32>
    %25 = tpu.matmul %23, %24, %cst_14 {dimension_numbers = #tpu.dot_dimension_numbers<[1], [0], [0], [1], [0, 0, 1, 1], [], []>} : vector<32x512xbf16>, vector<512x128xbf16>, vector<32x128xf32> -> vector<32x128xf32>
    %26 = arith.addf %22, %25 : vector<32x128xf32>
    %c0_15 = arith.constant 0 : index
    %c0_16 = arith.constant 0 : index
    %27 = vector.load %arg11[%c0_15, %c0_16] : memref<32x128xf32, #tpu.memory_space<vmem>>, vector<32x128xf32>
    tpu.vector_store %arg11[%c0_15, %c0_16], %26 {strides = array<i32>} : memref<32x128xf32, #tpu.memory_space<vmem>>, vector<32x128xf32>,
    %c0_i32_17 = arith.constant 0 : i32
    %28 = arith.cmpi eq, %arg1, %c0_i32_17 : i32
    %29 = arith.extui %28 : i1 to i32
    %c0_i32_18 = arith.constant 0 : i32
    %30 = arith.cmpi ne, %29, %c0_i32_18 : i32
    scf.if %30 {
      %c0_19 = arith.constant 0 : index
      %c0_20 = arith.constant 0 : index
      %31 = vector.load %arg11[%c0_19, %c0_20] : memref<32x128xf32, #tpu.memory_space<vmem>>, vector<32x128xf32>
      %c0_21 = arith.constant 0 : index
      %c0_22 = arith.constant 0 : index
      %32 = vector.load %arg8[%c0_21, %c0_22] : memref<1x128xf32, #tpu.memory_space<vmem>>, vector<1x128xf32>
      %33 = vector.broadcast %32 : vector<1x128xf32> to vector<32x128xf32>
      %34 = arith.addf %31, %33 : vector<32x128xf32>
      %c0_23 = arith.constant 0 : index
      %c0_24 = arith.constant 0 : index
      %35 = vector.load %arg9[%c0_23, %c0_24] : memref<32x128xbf16, #tpu.memory_space<vmem>>, vector<32x128xbf16>
      %36 = arith.extf %35 : vector<32x128xbf16> to vector<32x128xf32>
      %37 = arith.addf %34, %36 : vector<32x128xf32>
      %38 = arith.truncf %37 : vector<32x128xf32> to vector<32x128xbf16>
      %c0_25 = arith.constant 0 : index
      %c0_26 = arith.constant 0 : index
      %39 = vector.load %arg10[%c0_25, %c0_26] : memref<32x128xbf16, #tpu.memory_space<vmem>>, vector<32x128xbf16>
      tpu.vector_store %arg10[%c0_25, %c0_26], %38 {strides = array<i32>} : memref<32x128xbf16, #tpu.memory_space<vmem>>, vector<32x128xbf16>,
    } else {
    }
    return
  }
  func.func @transform_0(%arg0: i32, %arg1: i32) -> (i32, i32) {
    %c0_i32 = arith.constant 0 : i32
    %c0_i32_0 = arith.constant 0 : i32
    return %arg0, %c0_i32 : i32, i32
  }
  func.func @transform_1(%arg0: i32, %arg1: i32) -> (i32, i32) {
    %c0_i32 = arith.constant 0 : i32
    %c0_i32_0 = arith.constant 0 : i32
    %c0_i32_1 = arith.constant 0 : i32
    return %c0_i32, %c0_i32_0 : i32, i32
  }
  func.func @transform_2(%arg0: i32, %arg1: i32) -> (i32, i32) {
    %c0_i32 = arith.constant 0 : i32
    %c0_i32_0 = arith.constant 0 : i32
    %c0_i32_1 = arith.constant 0 : i32
    return %c0_i32, %c0_i32_0 : i32, i32
  }
  func.func @transform_3(%arg0: i32, %arg1: i32) -> (i32, i32) {
    %c0_i32 = arith.constant 0 : i32
    %c0_i32_0 = arith.constant 0 : i32
    return %c0_i32, %arg1 : i32, i32
  }
  func.func @transform_4(%arg0: i32, %arg1: i32) -> (i32, i32) {
    %c0_i32 = arith.constant 0 : i32
    %c0_i32_0 = arith.constant 0 : i32
    return %c0_i32, %arg1 : i32, i32
  }
  func.func @transform_5(%arg0: i32, %arg1: i32) -> (i32, i32) {
    %c0_i32 = arith.constant 0 : i32
    %c0_i32_0 = arith.constant 0 : i32
    return %arg1, %c0_i32 : i32, i32
  }
  func.func @transform_6(%arg0: i32, %arg1: i32) -> (i32, i32) {
    %c0_i32 = arith.constant 0 : i32
    %c0_i32_0 = arith.constant 0 : i32
    %c0_i32_1 = arith.constant 0 : i32
    return %c0_i32, %c0_i32_0 : i32, i32
  }
  func.func @transform_7(%arg0: i32, %arg1: i32) -> (i32, i32) {
    %c0_i32 = arith.constant 0 : i32
    %c0_i32_0 = arith.constant 0 : i32
    return %arg0, %c0_i32 : i32, i32
  }
  func.func @transform_8(%arg0: i32, %arg1: i32) -> (i32, i32) {
    %c0_i32 = arith.constant 0 : i32
    %c0_i32_0 = arith.constant 0 : i32
    return %arg0, %c0_i32 : i32, i32
  }
}

module attributes {stable_mosaic.version = 11 : i64} {
  func.func @_flash_attn_kernel(%arg0: i32, %arg1: i32, %arg2: i32, %arg3: memref<1x16x128xbf16, #tpu.memory_space<vmem>>, %arg4: memref<1x16x128xbf16, #tpu.memory_space<vmem>>, %arg5: memref<1x16x128xbf16, #tpu.memory_space<vmem>>, %arg6: memref<1x16x128xbf16, #tpu.memory_space<vmem>>, %arg7: memref<2x16x128xf32, #tpu.memory_space<vmem>>, %arg8: memref<2x16x128xf32, #tpu.memory_space<vmem>>, %arg9: memref<2x16x64xf32, #tpu.memory_space<vmem>>) attributes {dimension_semantics = [#tpu.dimension_semantics<parallel>, #tpu.dimension_semantics<parallel>, #tpu.dimension_semantics<arbitrary>], iteration_bounds = array<i64: 2, 1, 1>, scalar_prefetch = 0 : i64, scratch_operands = 3 : i64, tpu.core_type = #tpu.core_type<tc>, window_params = [{transform_indices = @transform_0, window_bounds = array<i64: 1, 16, 128>}, {transform_indices = @transform_1, window_bounds = array<i64: 1, 16, 128>}, {transform_indices = @transform_2, window_bounds = array<i64: 1, 16, 128>}, {transform_indices = @transform_3, window_bounds = array<i64: 1, 16, 128>}]} {
    %c0_i32 = arith.constant 0 : i32
    %0 = arith.cmpi eq, %arg2, %c0_i32 : i32
    %1 = arith.extui %0 : i1 to i32
    %c0_i32_0 = arith.constant 0 : i32
    %2 = arith.cmpi ne, %1, %c0_i32_0 : i32
    scf.if %2 {
      %cst = arith.constant 0xFF800000 : f32
      %12 = vector.broadcast %cst : f32 to vector<2x16x128xf32>
      %c0 = arith.constant 0 : index
      %c0_5 = arith.constant 0 : index
      %c0_6 = arith.constant 0 : index
      %13 = vector.load %arg7[%c0, %c0_5, %c0_6] : memref<2x16x128xf32, #tpu.memory_space<vmem>>, vector<2x16x128xf32>
      tpu.vector_store %arg7[%c0, %c0_5, %c0_6], %12 {strides = array<i32>} : memref<2x16x128xf32, #tpu.memory_space<vmem>>, vector<2x16x128xf32>,
      %cst_7 = arith.constant 0.000000e+00 : f32
      %14 = vector.broadcast %cst_7 : f32 to vector<2x16x128xf32>
      %c0_8 = arith.constant 0 : index
      %c0_9 = arith.constant 0 : index
      %c0_10 = arith.constant 0 : index
      %15 = vector.load %arg8[%c0_8, %c0_9, %c0_10] : memref<2x16x128xf32, #tpu.memory_space<vmem>>, vector<2x16x128xf32>
      tpu.vector_store %arg8[%c0_8, %c0_9, %c0_10], %14 {strides = array<i32>} : memref<2x16x128xf32, #tpu.memory_space<vmem>>, vector<2x16x128xf32>,
      %cst_11 = arith.constant 0.000000e+00 : f32
      %16 = vector.broadcast %cst_11 : f32 to vector<2x16x64xf32>
      %c0_12 = arith.constant 0 : index
      %c0_13 = arith.constant 0 : index
      %c0_14 = arith.constant 0 : index
      %17 = vector.load %arg9[%c0_12, %c0_13, %c0_14] : memref<2x16x64xf32, #tpu.memory_space<vmem>>, vector<2x16x64xf32>
      tpu.vector_store %arg9[%c0_12, %c0_13, %c0_14], %16 {strides = array<i32>} : memref<2x16x64xf32, #tpu.memory_space<vmem>>, vector<2x16x64xf32>,
    } else {
    }
    %3 = arith.cmpi slt, %arg2, %arg1 : i32
    %4 = arith.extui %3 : i1 to i32
    %c0_i32_1 = arith.constant 0 : i32
    %5 = arith.cmpi ne, %4, %c0_i32_1 : i32
    scf.if %5 {
      %c0 = arith.constant 0 : index
      %c0_5 = arith.constant 0 : index
      %c0_6 = arith.constant 0 : index
      %12 = vector.load %arg3[%c0, %c0_5, %c0_6] : memref<1x16x128xbf16, #tpu.memory_space<vmem>>, vector<1x16x128xbf16>
      %13 = vector.shape_cast %12 : vector<1x16x128xbf16> to vector<16x128xbf16>
      %14 = arith.extf %13 : vector<16x128xbf16> to vector<16x128xf32>
      %cst = arith.constant 1.250000e-01 : f32
      %15 = vector.broadcast %cst : f32 to vector<16x128xf32>
      %16 = arith.mulf %14, %15 : vector<16x128xf32>
      %17 = arith.truncf %16 : vector<16x128xf32> to vector<16x128xbf16>
      %c0_7 = arith.constant 0 : index
      %c0_8 = arith.constant 0 : index
      %c0_9 = arith.constant 0 : index
      %18 = vector.load %arg4[%c0_7, %c0_8, %c0_9] : memref<1x16x128xbf16, #tpu.memory_space<vmem>>, vector<1x16x128xbf16>
      %19 = vector.shape_cast %18 : vector<1x16x128xbf16> to vector<16x128xbf16>
      %c0_10 = arith.constant 0 : index
      %c0_11 = arith.constant 0 : index
      %c0_12 = arith.constant 0 : index
      %20 = vector.load %arg5[%c0_10, %c0_11, %c0_12] : memref<1x16x128xbf16, #tpu.memory_space<vmem>>, vector<1x16x128xbf16>
      %21 = vector.shape_cast %20 : vector<1x16x128xbf16> to vector<16x128xbf16>
      %22 = vector.extract_strided_slice %17 {offsets = [0, 0], sizes = [16, 64], strides = [1, 1]} : vector<16x128xbf16> to vector<16x64xbf16>
      %23 = vector.extract_strided_slice %19 {offsets = [0, 0], sizes = [16, 64], strides = [1, 1]} : vector<16x128xbf16> to vector<16x64xbf16>
      %cst_13 = arith.constant dense<0.000000e+00> : vector<16x16xf32>
      %24 = tpu.matmul %22, %23, %cst_13 {dimension_numbers = #tpu.dot_dimension_numbers<[1], [1], [0], [0], [0, 0, 1, 0], [], []>} : vector<16x64xbf16>, vector<16x64xbf16>, vector<16x16xf32> -> vector<16x16xf32>
      %c0_14 = arith.constant 0 : index
      %c0_15 = arith.constant 0 : index
      %c0_16 = arith.constant 0 : index
      %25 = vector.load %arg7[%c0_14, %c0_15, %c0_16] : memref<2x16x128xf32, #tpu.memory_space<vmem>>, vector<1x16x128xf32>
      %26 = vector.shape_cast %25 : vector<1x16x128xf32> to vector<16x128xf32>
      %cst_17 = arith.constant dense<0xFF800000> : vector<16xf32>
      %27 = vector.multi_reduction <maximumf>, %24, %cst_17 [1] : vector<16x16xf32> to vector<16xf32>
      %28 = vector.shape_cast %27 : vector<16xf32> to vector<16x1xf32>
      %29 = vector.broadcast %28 : vector<16x1xf32> to vector<16x128xf32>
      %30 = arith.maximumf %26, %29 : vector<16x128xf32>
      %31 = arith.subf %26, %30 : vector<16x128xf32>
      %32 = math.exp %31 : vector<16x128xf32>
      %33 = vector.extract_strided_slice %30 {offsets = [0, 0], sizes = [16, 1], strides = [1, 1]} : vector<16x128xf32> to vector<16x1xf32>
      %34 = vector.broadcast %33 : vector<16x1xf32> to vector<16x16xf32>
      %35 = arith.subf %24, %34 : vector<16x16xf32>
      %36 = math.exp %35 : vector<16x16xf32>
      %c0_18 = arith.constant 0 : index
      %c0_19 = arith.constant 0 : index
      %c0_20 = arith.constant 0 : index
      %37 = vector.load %arg8[%c0_18, %c0_19, %c0_20] : memref<2x16x128xf32, #tpu.memory_space<vmem>>, vector<1x16x128xf32>
      %38 = vector.shape_cast %37 : vector<1x16x128xf32> to vector<16x128xf32>
      %39 = arith.mulf %32, %38 : vector<16x128xf32>
      %cst_21 = arith.constant dense<0.000000e+00> : vector<16xf32>
      %40 = vector.multi_reduction <add>, %36, %cst_21 [1] : vector<16x16xf32> to vector<16xf32>
      %41 = vector.shape_cast %40 : vector<16xf32> to vector<16x1xf32>
      %42 = vector.broadcast %41 : vector<16x1xf32> to vector<16x128xf32>
      %43 = arith.addf %39, %42 : vector<16x128xf32>
      %c0_22 = arith.constant 0 : index
      %c0_23 = arith.constant 0 : index
      %c0_24 = arith.constant 0 : index
      %44 = vector.load %arg8[%c0_22, %c0_23, %c0_24] : memref<2x16x128xf32, #tpu.memory_space<vmem>>, vector<1x16x128xf32>
      %45 = vector.shape_cast %44 : vector<1x16x128xf32> to vector<16x128xf32>
      %46 = vector.shape_cast %43 : vector<16x128xf32> to vector<1x16x128xf32>
      tpu.vector_store %arg8[%c0_22, %c0_23, %c0_24], %46 {strides = array<i32>} : memref<2x16x128xf32, #tpu.memory_space<vmem>>, vector<1x16x128xf32>,
      %c0_25 = arith.constant 0 : index
      %c0_26 = arith.constant 0 : index
      %c0_27 = arith.constant 0 : index
      %47 = vector.load %arg7[%c0_25, %c0_26, %c0_27] : memref<2x16x128xf32, #tpu.memory_space<vmem>>, vector<1x16x128xf32>
      %48 = vector.shape_cast %47 : vector<1x16x128xf32> to vector<16x128xf32>
      %49 = vector.shape_cast %30 : vector<16x128xf32> to vector<1x16x128xf32>
      tpu.vector_store %arg7[%c0_25, %c0_26, %c0_27], %49 {strides = array<i32>} : memref<2x16x128xf32, #tpu.memory_space<vmem>>, vector<1x16x128xf32>,
      %50 = vector.extract_strided_slice %32 {offsets = [0, 0], sizes = [16, 1], strides = [1, 1]} : vector<16x128xf32> to vector<16x1xf32>
      %c0_28 = arith.constant 0 : index
      %c0_29 = arith.constant 0 : index
      %c0_30 = arith.constant 0 : index
      %51 = vector.load %arg9[%c0_28, %c0_29, %c0_30] : memref<2x16x64xf32, #tpu.memory_space<vmem>>, vector<1x16x64xf32>
      %52 = vector.shape_cast %51 : vector<1x16x64xf32> to vector<16x64xf32>
      %53 = vector.broadcast %50 : vector<16x1xf32> to vector<16x64xf32>
      %54 = arith.mulf %53, %52 : vector<16x64xf32>
      %55 = arith.truncf %36 : vector<16x16xf32> to vector<16x16xbf16>
      %56 = vector.extract_strided_slice %21 {offsets = [0, 0], sizes = [16, 64], strides = [1, 1]} : vector<16x128xbf16> to vector<16x64xbf16>
      %cst_31 = arith.constant dense<0.000000e+00> : vector<16x64xf32>
      %57 = tpu.matmul %55, %56, %cst_31 {dimension_numbers = #tpu.dot_dimension_numbers<[1], [0], [0], [1], [0, 0, 1, 1], [], []>} : vector<16x16xbf16>, vector<16x64xbf16>, vector<16x64xf32> -> vector<16x64xf32>
      %58 = arith.addf %54, %57 : vector<16x64xf32>
      %c0_32 = arith.constant 0 : index
      %c0_33 = arith.constant 0 : index
      %c0_34 = arith.constant 0 : index
      %59 = vector.load %arg9[%c0_32, %c0_33, %c0_34] : memref<2x16x64xf32, #tpu.memory_space<vmem>>, vector<1x16x64xf32>
      %60 = vector.shape_cast %59 : vector<1x16x64xf32> to vector<16x64xf32>
      %61 = vector.shape_cast %58 : vector<16x64xf32> to vector<1x16x64xf32>
      tpu.vector_store %arg9[%c0_32, %c0_33, %c0_34], %61 {strides = array<i32>} : memref<2x16x64xf32, #tpu.memory_space<vmem>>, vector<1x16x64xf32>,
      %62 = vector.extract_strided_slice %17 {offsets = [0, 64], sizes = [16, 64], strides = [1, 1]} : vector<16x128xbf16> to vector<16x64xbf16>
      %63 = vector.extract_strided_slice %19 {offsets = [0, 64], sizes = [16, 64], strides = [1, 1]} : vector<16x128xbf16> to vector<16x64xbf16>
      %cst_35 = arith.constant dense<0.000000e+00> : vector<16x16xf32>
      %64 = tpu.matmul %62, %63, %cst_35 {dimension_numbers = #tpu.dot_dimension_numbers<[1], [1], [0], [0], [0, 0, 1, 0], [], []>} : vector<16x64xbf16>, vector<16x64xbf16>, vector<16x16xf32> -> vector<16x16xf32>
      %c1 = arith.constant 1 : index
      %c0_36 = arith.constant 0 : index
      %c0_37 = arith.constant 0 : index
      %65 = vector.load %arg7[%c1, %c0_36, %c0_37] : memref<2x16x128xf32, #tpu.memory_space<vmem>>, vector<1x16x128xf32>
      %66 = vector.shape_cast %65 : vector<1x16x128xf32> to vector<16x128xf32>
      %cst_38 = arith.constant dense<0xFF800000> : vector<16xf32>
      %67 = vector.multi_reduction <maximumf>, %64, %cst_38 [1] : vector<16x16xf32> to vector<16xf32>
      %68 = vector.shape_cast %67 : vector<16xf32> to vector<16x1xf32>
      %69 = vector.broadcast %68 : vector<16x1xf32> to vector<16x128xf32>
      %70 = arith.maximumf %66, %69 : vector<16x128xf32>
      %71 = arith.subf %66, %70 : vector<16x128xf32>
      %72 = math.exp %71 : vector<16x128xf32>
      %73 = vector.extract_strided_slice %70 {offsets = [0, 0], sizes = [16, 1], strides = [1, 1]} : vector<16x128xf32> to vector<16x1xf32>
      %74 = vector.broadcast %73 : vector<16x1xf32> to vector<16x16xf32>
      %75 = arith.subf %64, %74 : vector<16x16xf32>
      %76 = math.exp %75 : vector<16x16xf32>
      %c1_39 = arith.constant 1 : index
      %c0_40 = arith.constant 0 : index
      %c0_41 = arith.constant 0 : index
      %77 = vector.load %arg8[%c1_39, %c0_40, %c0_41] : memref<2x16x128xf32, #tpu.memory_space<vmem>>, vector<1x16x128xf32>
      %78 = vector.shape_cast %77 : vector<1x16x128xf32> to vector<16x128xf32>
      %79 = arith.mulf %72, %78 : vector<16x128xf32>
      %cst_42 = arith.constant dense<0.000000e+00> : vector<16xf32>
      %80 = vector.multi_reduction <add>, %76, %cst_42 [1] : vector<16x16xf32> to vector<16xf32>
      %81 = vector.shape_cast %80 : vector<16xf32> to vector<16x1xf32>
      %82 = vector.broadcast %81 : vector<16x1xf32> to vector<16x128xf32>
      %83 = arith.addf %79, %82 : vector<16x128xf32>
      %c1_43 = arith.constant 1 : index
      %c0_44 = arith.constant 0 : index
      %c0_45 = arith.constant 0 : index
      %84 = vector.load %arg8[%c1_43, %c0_44, %c0_45] : memref<2x16x128xf32, #tpu.memory_space<vmem>>, vector<1x16x128xf32>
      %85 = vector.shape_cast %84 : vector<1x16x128xf32> to vector<16x128xf32>
      %86 = vector.shape_cast %83 : vector<16x128xf32> to vector<1x16x128xf32>
      tpu.vector_store %arg8[%c1_43, %c0_44, %c0_45], %86 {strides = array<i32>} : memref<2x16x128xf32, #tpu.memory_space<vmem>>, vector<1x16x128xf32>,
      %c1_46 = arith.constant 1 : index
      %c0_47 = arith.constant 0 : index
      %c0_48 = arith.constant 0 : index
      %87 = vector.load %arg7[%c1_46, %c0_47, %c0_48] : memref<2x16x128xf32, #tpu.memory_space<vmem>>, vector<1x16x128xf32>
      %88 = vector.shape_cast %87 : vector<1x16x128xf32> to vector<16x128xf32>
      %89 = vector.shape_cast %70 : vector<16x128xf32> to vector<1x16x128xf32>
      tpu.vector_store %arg7[%c1_46, %c0_47, %c0_48], %89 {strides = array<i32>} : memref<2x16x128xf32, #tpu.memory_space<vmem>>, vector<1x16x128xf32>,
      %90 = vector.extract_strided_slice %72 {offsets = [0, 0], sizes = [16, 1], strides = [1, 1]} : vector<16x128xf32> to vector<16x1xf32>
      %c1_49 = arith.constant 1 : index
      %c0_50 = arith.constant 0 : index
      %c0_51 = arith.constant 0 : index
      %91 = vector.load %arg9[%c1_49, %c0_50, %c0_51] : memref<2x16x64xf32, #tpu.memory_space<vmem>>, vector<1x16x64xf32>
      %92 = vector.shape_cast %91 : vector<1x16x64xf32> to vector<16x64xf32>
      %93 = vector.broadcast %90 : vector<16x1xf32> to vector<16x64xf32>
      %94 = arith.mulf %93, %92 : vector<16x64xf32>
      %95 = arith.truncf %76 : vector<16x16xf32> to vector<16x16xbf16>
      %96 = vector.extract_strided_slice %21 {offsets = [0, 64], sizes = [16, 64], strides = [1, 1]} : vector<16x128xbf16> to vector<16x64xbf16>
      %cst_52 = arith.constant dense<0.000000e+00> : vector<16x64xf32>
      %97 = tpu.matmul %95, %96, %cst_52 {dimension_numbers = #tpu.dot_dimension_numbers<[1], [0], [0], [1], [0, 0, 1, 1], [], []>} : vector<16x16xbf16>, vector<16x64xbf16>, vector<16x64xf32> -> vector<16x64xf32>
      %98 = arith.addf %94, %97 : vector<16x64xf32>
      %c1_53 = arith.constant 1 : index
      %c0_54 = arith.constant 0 : index
      %c0_55 = arith.constant 0 : index
      %99 = vector.load %arg9[%c1_53, %c0_54, %c0_55] : memref<2x16x64xf32, #tpu.memory_space<vmem>>, vector<1x16x64xf32>
      %100 = vector.shape_cast %99 : vector<1x16x64xf32> to vector<16x64xf32>
      %101 = vector.shape_cast %98 : vector<16x64xf32> to vector<1x16x64xf32>
      tpu.vector_store %arg9[%c1_53, %c0_54, %c0_55], %101 {strides = array<i32>} : memref<2x16x64xf32, #tpu.memory_space<vmem>>, vector<1x16x64xf32>,
    } else {
    }
    %6 = arith.cmpi eq, %arg2, %arg1 : i32
    %7 = arith.extui %6 : i1 to i32
    %c0_i32_2 = arith.constant 0 : i32
    %8 = arith.cmpi ne, %7, %c0_i32_2 : i32
    scf.if %8 {
      %c0 = arith.constant 0 : index
      %c0_5 = arith.constant 0 : index
      %c0_6 = arith.constant 0 : index
      %12 = vector.load %arg3[%c0, %c0_5, %c0_6] : memref<1x16x128xbf16, #tpu.memory_space<vmem>>, vector<1x16x128xbf16>
      %13 = vector.shape_cast %12 : vector<1x16x128xbf16> to vector<16x128xbf16>
      %14 = arith.extf %13 : vector<16x128xbf16> to vector<16x128xf32>
      %cst = arith.constant 1.250000e-01 : f32
      %15 = vector.broadcast %cst : f32 to vector<16x128xf32>
      %16 = arith.mulf %14, %15 : vector<16x128xf32>
      %17 = arith.truncf %16 : vector<16x128xf32> to vector<16x128xbf16>
      %c0_7 = arith.constant 0 : index
      %c0_8 = arith.constant 0 : index
      %c0_9 = arith.constant 0 : index
      %18 = vector.load %arg4[%c0_7, %c0_8, %c0_9] : memref<1x16x128xbf16, #tpu.memory_space<vmem>>, vector<1x16x128xbf16>
      %19 = vector.shape_cast %18 : vector<1x16x128xbf16> to vector<16x128xbf16>
      %c0_10 = arith.constant 0 : index
      %c0_11 = arith.constant 0 : index
      %c0_12 = arith.constant 0 : index
      %20 = vector.load %arg5[%c0_10, %c0_11, %c0_12] : memref<1x16x128xbf16, #tpu.memory_space<vmem>>, vector<1x16x128xbf16>
      %21 = vector.shape_cast %20 : vector<1x16x128xbf16> to vector<16x128xbf16>
      %22 = tpu.iota {dimensions = array<i32: 0>} : vector<16x16xi32>
      %23 = tpu.iota {dimensions = array<i32: 1>} : vector<16x16xi32>
      %24 = arith.cmpi sle, %23, %22 : vector<16x16xi32>
      %25 = vector.extract_strided_slice %17 {offsets = [0, 0], sizes = [16, 64], strides = [1, 1]} : vector<16x128xbf16> to vector<16x64xbf16>
      %26 = vector.extract_strided_slice %19 {offsets = [0, 0], sizes = [16, 64], strides = [1, 1]} : vector<16x128xbf16> to vector<16x64xbf16>
      %cst_13 = arith.constant dense<0.000000e+00> : vector<16x16xf32>
      %27 = tpu.matmul %25, %26, %cst_13 {dimension_numbers = #tpu.dot_dimension_numbers<[1], [1], [0], [0], [0, 0, 1, 0], [], []>} : vector<16x64xbf16>, vector<16x64xbf16>, vector<16x16xf32> -> vector<16x16xf32>
      %cst_14 = arith.constant -1.000000e+30 : f32
      %28 = vector.broadcast %cst_14 : f32 to vector<16x16xf32>
      %29 = arith.select %24, %27, %28 : vector<16x16xi1>, vector<16x16xf32>
      %c0_15 = arith.constant 0 : index
      %c0_16 = arith.constant 0 : index
      %c0_17 = arith.constant 0 : index
      %30 = vector.load %arg7[%c0_15, %c0_16, %c0_17] : memref<2x16x128xf32, #tpu.memory_space<vmem>>, vector<1x16x128xf32>
      %31 = vector.shape_cast %30 : vector<1x16x128xf32> to vector<16x128xf32>
      %cst_18 = arith.constant dense<0xFF800000> : vector<16xf32>
      %32 = vector.multi_reduction <maximumf>, %29, %cst_18 [1] : vector<16x16xf32> to vector<16xf32>
      %33 = vector.shape_cast %32 : vector<16xf32> to vector<16x1xf32>
      %34 = vector.broadcast %33 : vector<16x1xf32> to vector<16x128xf32>
      %35 = arith.maximumf %31, %34 : vector<16x128xf32>
      %36 = arith.subf %31, %35 : vector<16x128xf32>
      %37 = math.exp %36 : vector<16x128xf32>
      %38 = vector.extract_strided_slice %35 {offsets = [0, 0], sizes = [16, 1], strides = [1, 1]} : vector<16x128xf32> to vector<16x1xf32>
      %39 = vector.broadcast %38 : vector<16x1xf32> to vector<16x16xf32>
      %40 = arith.subf %29, %39 : vector<16x16xf32>
      %41 = math.exp %40 : vector<16x16xf32>
      %c0_19 = arith.constant 0 : index
      %c0_20 = arith.constant 0 : index
      %c0_21 = arith.constant 0 : index
      %42 = vector.load %arg8[%c0_19, %c0_20, %c0_21] : memref<2x16x128xf32, #tpu.memory_space<vmem>>, vector<1x16x128xf32>
      %43 = vector.shape_cast %42 : vector<1x16x128xf32> to vector<16x128xf32>
      %44 = arith.mulf %37, %43 : vector<16x128xf32>
      %cst_22 = arith.constant dense<0.000000e+00> : vector<16xf32>
      %45 = vector.multi_reduction <add>, %41, %cst_22 [1] : vector<16x16xf32> to vector<16xf32>
      %46 = vector.shape_cast %45 : vector<16xf32> to vector<16x1xf32>
      %47 = vector.broadcast %46 : vector<16x1xf32> to vector<16x128xf32>
      %48 = arith.addf %44, %47 : vector<16x128xf32>
      %c0_23 = arith.constant 0 : index
      %c0_24 = arith.constant 0 : index
      %c0_25 = arith.constant 0 : index
      %49 = vector.load %arg8[%c0_23, %c0_24, %c0_25] : memref<2x16x128xf32, #tpu.memory_space<vmem>>, vector<1x16x128xf32>
      %50 = vector.shape_cast %49 : vector<1x16x128xf32> to vector<16x128xf32>
      %51 = vector.shape_cast %48 : vector<16x128xf32> to vector<1x16x128xf32>
      tpu.vector_store %arg8[%c0_23, %c0_24, %c0_25], %51 {strides = array<i32>} : memref<2x16x128xf32, #tpu.memory_space<vmem>>, vector<1x16x128xf32>,
      %c0_26 = arith.constant 0 : index
      %c0_27 = arith.constant 0 : index
      %c0_28 = arith.constant 0 : index
      %52 = vector.load %arg7[%c0_26, %c0_27, %c0_28] : memref<2x16x128xf32, #tpu.memory_space<vmem>>, vector<1x16x128xf32>
      %53 = vector.shape_cast %52 : vector<1x16x128xf32> to vector<16x128xf32>
      %54 = vector.shape_cast %35 : vector<16x128xf32> to vector<1x16x128xf32>
      tpu.vector_store %arg7[%c0_26, %c0_27, %c0_28], %54 {strides = array<i32>} : memref<2x16x128xf32, #tpu.memory_space<vmem>>, vector<1x16x128xf32>,
      %55 = vector.extract_strided_slice %37 {offsets = [0, 0], sizes = [16, 1], strides = [1, 1]} : vector<16x128xf32> to vector<16x1xf32>
      %c0_29 = arith.constant 0 : index
      %c0_30 = arith.constant 0 : index
      %c0_31 = arith.constant 0 : index
      %56 = vector.load %arg9[%c0_29, %c0_30, %c0_31] : memref<2x16x64xf32, #tpu.memory_space<vmem>>, vector<1x16x64xf32>
      %57 = vector.shape_cast %56 : vector<1x16x64xf32> to vector<16x64xf32>
      %58 = vector.broadcast %55 : vector<16x1xf32> to vector<16x64xf32>
      %59 = arith.mulf %58, %57 : vector<16x64xf32>
      %60 = arith.truncf %41 : vector<16x16xf32> to vector<16x16xbf16>
      %61 = vector.extract_strided_slice %21 {offsets = [0, 0], sizes = [16, 64], strides = [1, 1]} : vector<16x128xbf16> to vector<16x64xbf16>
      %cst_32 = arith.constant dense<0.000000e+00> : vector<16x64xf32>
      %62 = tpu.matmul %60, %61, %cst_32 {dimension_numbers = #tpu.dot_dimension_numbers<[1], [0], [0], [1], [0, 0, 1, 1], [], []>} : vector<16x16xbf16>, vector<16x64xbf16>, vector<16x64xf32> -> vector<16x64xf32>
      %63 = arith.addf %59, %62 : vector<16x64xf32>
      %c0_33 = arith.constant 0 : index
      %c0_34 = arith.constant 0 : index
      %c0_35 = arith.constant 0 : index
      %64 = vector.load %arg9[%c0_33, %c0_34, %c0_35] : memref<2x16x64xf32, #tpu.memory_space<vmem>>, vector<1x16x64xf32>
      %65 = vector.shape_cast %64 : vector<1x16x64xf32> to vector<16x64xf32>
      %66 = vector.shape_cast %63 : vector<16x64xf32> to vector<1x16x64xf32>
      tpu.vector_store %arg9[%c0_33, %c0_34, %c0_35], %66 {strides = array<i32>} : memref<2x16x64xf32, #tpu.memory_space<vmem>>, vector<1x16x64xf32>,
      %67 = vector.extract_strided_slice %17 {offsets = [0, 64], sizes = [16, 64], strides = [1, 1]} : vector<16x128xbf16> to vector<16x64xbf16>
      %68 = vector.extract_strided_slice %19 {offsets = [0, 64], sizes = [16, 64], strides = [1, 1]} : vector<16x128xbf16> to vector<16x64xbf16>
      %cst_36 = arith.constant dense<0.000000e+00> : vector<16x16xf32>
      %69 = tpu.matmul %67, %68, %cst_36 {dimension_numbers = #tpu.dot_dimension_numbers<[1], [1], [0], [0], [0, 0, 1, 0], [], []>} : vector<16x64xbf16>, vector<16x64xbf16>, vector<16x16xf32> -> vector<16x16xf32>
      %cst_37 = arith.constant -1.000000e+30 : f32
      %70 = vector.broadcast %cst_37 : f32 to vector<16x16xf32>
      %71 = arith.select %24, %69, %70 : vector<16x16xi1>, vector<16x16xf32>
      %c1 = arith.constant 1 : index
      %c0_38 = arith.constant 0 : index
      %c0_39 = arith.constant 0 : index
      %72 = vector.load %arg7[%c1, %c0_38, %c0_39] : memref<2x16x128xf32, #tpu.memory_space<vmem>>, vector<1x16x128xf32>
      %73 = vector.shape_cast %72 : vector<1x16x128xf32> to vector<16x128xf32>
      %cst_40 = arith.constant dense<0xFF800000> : vector<16xf32>
      %74 = vector.multi_reduction <maximumf>, %71, %cst_40 [1] : vector<16x16xf32> to vector<16xf32>
      %75 = vector.shape_cast %74 : vector<16xf32> to vector<16x1xf32>
      %76 = vector.broadcast %75 : vector<16x1xf32> to vector<16x128xf32>
      %77 = arith.maximumf %73, %76 : vector<16x128xf32>
      %78 = arith.subf %73, %77 : vector<16x128xf32>
      %79 = math.exp %78 : vector<16x128xf32>
      %80 = vector.extract_strided_slice %77 {offsets = [0, 0], sizes = [16, 1], strides = [1, 1]} : vector<16x128xf32> to vector<16x1xf32>
      %81 = vector.broadcast %80 : vector<16x1xf32> to vector<16x16xf32>
      %82 = arith.subf %71, %81 : vector<16x16xf32>
      %83 = math.exp %82 : vector<16x16xf32>
      %c1_41 = arith.constant 1 : index
      %c0_42 = arith.constant 0 : index
      %c0_43 = arith.constant 0 : index
      %84 = vector.load %arg8[%c1_41, %c0_42, %c0_43] : memref<2x16x128xf32, #tpu.memory_space<vmem>>, vector<1x16x128xf32>
      %85 = vector.shape_cast %84 : vector<1x16x128xf32> to vector<16x128xf32>
      %86 = arith.mulf %79, %85 : vector<16x128xf32>
      %cst_44 = arith.constant dense<0.000000e+00> : vector<16xf32>
      %87 = vector.multi_reduction <add>, %83, %cst_44 [1] : vector<16x16xf32> to vector<16xf32>
      %88 = vector.shape_cast %87 : vector<16xf32> to vector<16x1xf32>
      %89 = vector.broadcast %88 : vector<16x1xf32> to vector<16x128xf32>
      %90 = arith.addf %86, %89 : vector<16x128xf32>
      %c1_45 = arith.constant 1 : index
      %c0_46 = arith.constant 0 : index
      %c0_47 = arith.constant 0 : index
      %91 = vector.load %arg8[%c1_45, %c0_46, %c0_47] : memref<2x16x128xf32, #tpu.memory_space<vmem>>, vector<1x16x128xf32>
      %92 = vector.shape_cast %91 : vector<1x16x128xf32> to vector<16x128xf32>
      %93 = vector.shape_cast %90 : vector<16x128xf32> to vector<1x16x128xf32>
      tpu.vector_store %arg8[%c1_45, %c0_46, %c0_47], %93 {strides = array<i32>} : memref<2x16x128xf32, #tpu.memory_space<vmem>>, vector<1x16x128xf32>,
      %c1_48 = arith.constant 1 : index
      %c0_49 = arith.constant 0 : index
      %c0_50 = arith.constant 0 : index
      %94 = vector.load %arg7[%c1_48, %c0_49, %c0_50] : memref<2x16x128xf32, #tpu.memory_space<vmem>>, vector<1x16x128xf32>
      %95 = vector.shape_cast %94 : vector<1x16x128xf32> to vector<16x128xf32>
      %96 = vector.shape_cast %77 : vector<16x128xf32> to vector<1x16x128xf32>
      tpu.vector_store %arg7[%c1_48, %c0_49, %c0_50], %96 {strides = array<i32>} : memref<2x16x128xf32, #tpu.memory_space<vmem>>, vector<1x16x128xf32>,
      %97 = vector.extract_strided_slice %79 {offsets = [0, 0], sizes = [16, 1], strides = [1, 1]} : vector<16x128xf32> to vector<16x1xf32>
      %c1_51 = arith.constant 1 : index
      %c0_52 = arith.constant 0 : index
      %c0_53 = arith.constant 0 : index
      %98 = vector.load %arg9[%c1_51, %c0_52, %c0_53] : memref<2x16x64xf32, #tpu.memory_space<vmem>>, vector<1x16x64xf32>
      %99 = vector.shape_cast %98 : vector<1x16x64xf32> to vector<16x64xf32>
      %100 = vector.broadcast %97 : vector<16x1xf32> to vector<16x64xf32>
      %101 = arith.mulf %100, %99 : vector<16x64xf32>
      %102 = arith.truncf %83 : vector<16x16xf32> to vector<16x16xbf16>
      %103 = vector.extract_strided_slice %21 {offsets = [0, 64], sizes = [16, 64], strides = [1, 1]} : vector<16x128xbf16> to vector<16x64xbf16>
      %cst_54 = arith.constant dense<0.000000e+00> : vector<16x64xf32>
      %104 = tpu.matmul %102, %103, %cst_54 {dimension_numbers = #tpu.dot_dimension_numbers<[1], [0], [0], [1], [0, 0, 1, 1], [], []>} : vector<16x16xbf16>, vector<16x64xbf16>, vector<16x64xf32> -> vector<16x64xf32>
      %105 = arith.addf %101, %104 : vector<16x64xf32>
      %c1_55 = arith.constant 1 : index
      %c0_56 = arith.constant 0 : index
      %c0_57 = arith.constant 0 : index
      %106 = vector.load %arg9[%c1_55, %c0_56, %c0_57] : memref<2x16x64xf32, #tpu.memory_space<vmem>>, vector<1x16x64xf32>
      %107 = vector.shape_cast %106 : vector<1x16x64xf32> to vector<16x64xf32>
      %108 = vector.shape_cast %105 : vector<16x64xf32> to vector<1x16x64xf32>
      tpu.vector_store %arg9[%c1_55, %c0_56, %c0_57], %108 {strides = array<i32>} : memref<2x16x64xf32, #tpu.memory_space<vmem>>, vector<1x16x64xf32>,
    } else {
    }
    %c0_i32_3 = arith.constant 0 : i32
    %9 = arith.cmpi eq, %arg2, %c0_i32_3 : i32
    %10 = arith.extui %9 : i1 to i32
    %c0_i32_4 = arith.constant 0 : i32
    %11 = arith.cmpi ne, %10, %c0_i32_4 : i32
    scf.if %11 {
      %c0 = arith.constant 0 : index
      %c0_5 = arith.constant 0 : index
      %c0_6 = arith.constant 0 : index
      %12 = vector.load %arg8[%c0, %c0_5, %c0_6] : memref<2x16x128xf32, #tpu.memory_space<vmem>>, vector<1x16x128xf32>
      %13 = vector.shape_cast %12 : vector<1x16x128xf32> to vector<16x128xf32>
      %14 = vector.extract_strided_slice %13 {offsets = [0, 0], sizes = [16, 1], strides = [1, 1]} : vector<16x128xf32> to vector<16x1xf32>
      %15 = tpu.reciprocal %14 {approx = true} : vector<16x1xf32> -> vector<16x1xf32>
      %c0_7 = arith.constant 0 : index
      %c0_8 = arith.constant 0 : index
      %c0_9 = arith.constant 0 : index
      %16 = vector.load %arg9[%c0_7, %c0_8, %c0_9] : memref<2x16x64xf32, #tpu.memory_space<vmem>>, vector<1x16x64xf32>
      %17 = vector.shape_cast %16 : vector<1x16x64xf32> to vector<16x64xf32>
      %18 = vector.broadcast %15 : vector<16x1xf32> to vector<16x64xf32>
      %19 = arith.mulf %17, %18 : vector<16x64xf32>
      %20 = arith.truncf %19 : vector<16x64xf32> to vector<16x64xbf16>
      %c0_10 = arith.constant 0 : index
      %c0_11 = arith.constant 0 : index
      %c0_12 = arith.constant 0 : index
      %21 = vector.load %arg6[%c0_10, %c0_11, %c0_12] : memref<1x16x128xbf16, #tpu.memory_space<vmem>>, vector<1x16x64xbf16>
      %22 = vector.shape_cast %21 : vector<1x16x64xbf16> to vector<16x64xbf16>
      %23 = vector.shape_cast %20 : vector<16x64xbf16> to vector<1x16x64xbf16>
      tpu.vector_store %arg6[%c0_10, %c0_11, %c0_12], %23 {strides = array<i32>} : memref<1x16x128xbf16, #tpu.memory_space<vmem>>, vector<1x16x64xbf16>,
      %c1 = arith.constant 1 : index
      %c0_13 = arith.constant 0 : index
      %c0_14 = arith.constant 0 : index
      %24 = vector.load %arg8[%c1, %c0_13, %c0_14] : memref<2x16x128xf32, #tpu.memory_space<vmem>>, vector<1x16x128xf32>
      %25 = vector.shape_cast %24 : vector<1x16x128xf32> to vector<16x128xf32>
      %26 = vector.extract_strided_slice %25 {offsets = [0, 0], sizes = [16, 1], strides = [1, 1]} : vector<16x128xf32> to vector<16x1xf32>
      %27 = tpu.reciprocal %26 {approx = true} : vector<16x1xf32> -> vector<16x1xf32>
      %c1_15 = arith.constant 1 : index
      %c0_16 = arith.constant 0 : index
      %c0_17 = arith.constant 0 : index
      %28 = vector.load %arg9[%c1_15, %c0_16, %c0_17] : memref<2x16x64xf32, #tpu.memory_space<vmem>>, vector<1x16x64xf32>
      %29 = vector.shape_cast %28 : vector<1x16x64xf32> to vector<16x64xf32>
      %30 = vector.broadcast %27 : vector<16x1xf32> to vector<16x64xf32>
      %31 = arith.mulf %29, %30 : vector<16x64xf32>
      %32 = arith.truncf %31 : vector<16x64xf32> to vector<16x64xbf16>
      %c0_18 = arith.constant 0 : index
      %c0_19 = arith.constant 0 : index
      %c64 = arith.constant 64 : index
      %33 = vector.load %arg6[%c0_18, %c0_19, %c64] : memref<1x16x128xbf16, #tpu.memory_space<vmem>>, vector<1x16x64xbf16>
      %34 = vector.shape_cast %33 : vector<1x16x64xbf16> to vector<16x64xbf16>
      %35 = vector.shape_cast %32 : vector<16x64xbf16> to vector<1x16x64xbf16>
      tpu.vector_store %arg6[%c0_18, %c0_19, %c64], %35 {strides = array<i32>} : memref<1x16x128xbf16, #tpu.memory_space<vmem>>, vector<1x16x64xbf16>,
    } else {
    }
    return
  }
  func.func @transform_0(%arg0: i32, %arg1: i32, %arg2: i32) -> (i32, i32, i32) {
    %c0_i32 = arith.constant 0 : i32
    %c0_i32_0 = arith.constant 0 : i32
    return %arg0, %arg1, %c0_i32 : i32, i32, i32
  }
  func.func @transform_1(%arg0: i32, %arg1: i32, %arg2: i32) -> (i32, i32, i32) {
    %0 = arith.minsi %arg1, %arg2 : i32
    %c1_i32 = arith.constant 1 : i32
    %c0_i32 = arith.constant 0 : i32
    return %arg0, %0, %c1_i32 : i32, i32, i32
  }
  func.func @transform_2(%arg0: i32, %arg1: i32, %arg2: i32) -> (i32, i32, i32) {
    %0 = arith.minsi %arg1, %arg2 : i32
    %c2_i32 = arith.constant 2 : i32
    %c0_i32 = arith.constant 0 : i32
    return %arg0, %0, %c2_i32 : i32, i32, i32
  }
  func.func @transform_3(%arg0: i32, %arg1: i32, %arg2: i32) -> (i32, i32, i32) {
    %c0_i32 = arith.constant 0 : i32
    %c0_i32_0 = arith.constant 0 : i32
    return %arg0, %arg1, %c0_i32 : i32, i32, i32
  }
}

module attributes {stable_mosaic.version = 11 : i64} {
  func.func @_ln_lm_head_kernel(%arg0: i32, %arg1: i32, %arg2: memref<32x128xbf16, #tpu.memory_space<vmem>>, %arg3: memref<1x128xf32, #tpu.memory_space<vmem>>, %arg4: memref<1x128xf32, #tpu.memory_space<vmem>>, %arg5: memref<128x128xbf16, #tpu.memory_space<vmem>>, %arg6: memref<32x128xbf16, #tpu.memory_space<vmem>>, %arg7: memref<32x128xbf16, #tpu.memory_space<vmem>>) attributes {dimension_semantics = [#tpu.dimension_semantics<parallel>, #tpu.dimension_semantics<arbitrary>], iteration_bounds = array<i64: 1, 1>, scalar_prefetch = 0 : i64, scratch_operands = 1 : i64, tpu.core_type = #tpu.core_type<tc>, window_params = [{transform_indices = @transform_0, window_bounds = array<i64: 32, 128>}, {pipeline_mode = #tpu.pipeline_mode<synchronous>, transform_indices = @transform_1, window_bounds = array<i64: 1, 128>}, {pipeline_mode = #tpu.pipeline_mode<synchronous>, transform_indices = @transform_2, window_bounds = array<i64: 1, 128>}, {transform_indices = @transform_3, window_bounds = array<i64: 128, 128>}, {transform_indices = @transform_4, window_bounds = array<i64: 32, 128>}]} {
    %c0_i32 = arith.constant 0 : i32
    %0 = arith.cmpi eq, %arg1, %c0_i32 : i32
    %1 = arith.extui %0 : i1 to i32
    %c0_i32_0 = arith.constant 0 : i32
    %2 = arith.cmpi ne, %1, %c0_i32_0 : i32
    scf.if %2 {
      %c0_6 = arith.constant 0 : index
      %c0_7 = arith.constant 0 : index
      %8 = vector.load %arg2[%c0_6, %c0_7] : memref<32x128xbf16, #tpu.memory_space<vmem>>, vector<32x128xbf16>
      %9 = arith.extf %8 : vector<32x128xbf16> to vector<32x128xf32>
      %c0_8 = arith.constant 0 : index
      %c0_9 = arith.constant 0 : index
      %10 = vector.load %arg3[%c0_8, %c0_9] : memref<1x128xf32, #tpu.memory_space<vmem>>, vector<1x128xf32>
      %c0_10 = arith.constant 0 : index
      %c0_11 = arith.constant 0 : index
      %11 = vector.load %arg4[%c0_10, %c0_11] : memref<1x128xf32, #tpu.memory_space<vmem>>, vector<1x128xf32>
      %cst_12 = arith.constant dense<0.000000e+00> : vector<32xf32>
      %12 = vector.multi_reduction <add>, %9, %cst_12 [1] : vector<32x128xf32> to vector<32xf32>
      %13 = vector.shape_cast %12 : vector<32xf32> to vector<32x1xf32>
      %cst_13 = arith.constant 1.280000e+02 : f32
      %14 = vector.broadcast %cst_13 : f32 to vector<32x1xf32>
      %15 = arith.divf %13, %14 : vector<32x1xf32>
      %16 = vector.broadcast %15 : vector<32x1xf32> to vector<32x128xf32>
      %17 = arith.subf %9, %16 : vector<32x128xf32>
      %18 = arith.mulf %17, %17 : vector<32x128xf32>
      %cst_14 = arith.constant dense<0.000000e+00> : vector<32xf32>
      %19 = vector.multi_reduction <add>, %18, %cst_14 [1] : vector<32x128xf32> to vector<32xf32>
      %20 = vector.shape_cast %19 : vector<32xf32> to vector<32x1xf32>
      %cst_15 = arith.constant 1.280000e+02 : f32
      %21 = vector.broadcast %cst_15 : f32 to vector<32x1xf32>
      %22 = arith.divf %20, %21 : vector<32x1xf32>
      %cst_16 = arith.constant 9.99999974E-6 : f32
      %23 = vector.broadcast %cst_16 : f32 to vector<32x1xf32>
      %24 = arith.addf %22, %23 : vector<32x1xf32>
      %25 = math.rsqrt %24 : vector<32x1xf32>
      %26 = vector.broadcast %25 : vector<32x1xf32> to vector<32x128xf32>
      %27 = arith.mulf %17, %26 : vector<32x128xf32>
      %28 = vector.broadcast %10 : vector<1x128xf32> to vector<32x128xf32>
      %29 = arith.mulf %27, %28 : vector<32x128xf32>
      %30 = vector.broadcast %11 : vector<1x128xf32> to vector<32x128xf32>
      %31 = arith.addf %29, %30 : vector<32x128xf32>
      %32 = arith.truncf %31 : vector<32x128xf32> to vector<32x128xbf16>
      %c0_17 = arith.constant 0 : index
      %c0_18 = arith.constant 0 : index
      %33 = vector.load %arg7[%c0_17, %c0_18] : memref<32x128xbf16, #tpu.memory_space<vmem>>, vector<32x128xbf16>
      tpu.vector_store %arg7[%c0_17, %c0_18], %32 {strides = array<i32>} : memref<32x128xbf16, #tpu.memory_space<vmem>>, vector<32x128xbf16>,
    } else {
    }
    %c0 = arith.constant 0 : index
    %c0_1 = arith.constant 0 : index
    %3 = vector.load %arg7[%c0, %c0_1] : memref<32x128xbf16, #tpu.memory_space<vmem>>, vector<32x128xbf16>
    %c0_2 = arith.constant 0 : index
    %c0_3 = arith.constant 0 : index
    %4 = vector.load %arg5[%c0_2, %c0_3] : memref<128x128xbf16, #tpu.memory_space<vmem>>, vector<128x128xbf16>
    %cst = arith.constant dense<0.000000e+00> : vector<32x128xf32>
    %5 = tpu.matmul %3, %4, %cst {dimension_numbers = #tpu.dot_dimension_numbers<[1], [1], [0], [0], [0, 0, 1, 0], [], []>} : vector<32x128xbf16>, vector<128x128xbf16>, vector<32x128xf32> -> vector<32x128xf32>
    %6 = arith.truncf %5 : vector<32x128xf32> to vector<32x128xbf16>
    %c0_4 = arith.constant 0 : index
    %c0_5 = arith.constant 0 : index
    %7 = vector.load %arg6[%c0_4, %c0_5] : memref<32x128xbf16, #tpu.memory_space<vmem>>, vector<32x128xbf16>
    tpu.vector_store %arg6[%c0_4, %c0_5], %6 {strides = array<i32>} : memref<32x128xbf16, #tpu.memory_space<vmem>>, vector<32x128xbf16>,
    return
  }
  func.func @transform_0(%arg0: i32, %arg1: i32) -> (i32, i32) {
    %c0_i32 = arith.constant 0 : i32
    %c0_i32_0 = arith.constant 0 : i32
    return %arg0, %c0_i32 : i32, i32
  }
  func.func @transform_1(%arg0: i32, %arg1: i32) -> (i32, i32) {
    %c0_i32 = arith.constant 0 : i32
    %c0_i32_0 = arith.constant 0 : i32
    %c0_i32_1 = arith.constant 0 : i32
    return %c0_i32, %c0_i32_0 : i32, i32
  }
  func.func @transform_2(%arg0: i32, %arg1: i32) -> (i32, i32) {
    %c0_i32 = arith.constant 0 : i32
    %c0_i32_0 = arith.constant 0 : i32
    %c0_i32_1 = arith.constant 0 : i32
    return %c0_i32, %c0_i32_0 : i32, i32
  }
  func.func @transform_3(%arg0: i32, %arg1: i32) -> (i32, i32) {
    %c0_i32 = arith.constant 0 : i32
    %c0_i32_0 = arith.constant 0 : i32
    return %arg1, %c0_i32 : i32, i32
  }
  func.func @transform_4(%arg0: i32, %arg1: i32) -> (i32, i32) {
    %c0_i32 = arith.constant 0 : i32
    return %arg0, %arg1 : i32, i32
  }
}

</mosaic_0001>

<bundles_post_ra>
// kernel: gpt_forward.11
= control target key start
LH: loop header
LB: loop body
LE: loop exit
PB: predicated region body
PF: predicated region fallthrough
CT: control target
= control target key end

     0   :  { %s339_s1 = inlined_call_operand.vmem [shape: bf16[128,128], index: 1, kind: input, shape index: {}]   ;;  %s340_s0 = inlined_call_operand.vmem [shape: bf16[32,128], index: 0, kind: input, shape index: {}]   ;;  %s341_s2 = inlined_call_operand.vmem [shape: f32[1,128], index: 2, kind: input, shape index: {}]   ;;  %s342_s3 = inlined_call_operand.vmem [shape: bf16[32,128], index: 3, kind: input, shape index: {}]   ;;  %s343_s4 = inlined_call_operand.vmem [shape: bf16[32,128], index: 4, kind: output, shape index: {}]  }
   0x1   :  { %v259_v0 = vld [vmem:[%s339_s1] sm:$0xff]   ;;  %v260_v1 = vld [vmem:[%s339_s1 + $0x8] sm:$0xff]   ;;  %v261_v2 = vld [vmem:[%s339_s1 + $0x10] sm:$0xff]  }
   0x2   :  { %239 = vmatprep.subr.bf16.mxu0 %v259_v0  ;;  %v262_v3 = vld [vmem:[%s339_s1 + $0x18] sm:$0xff]   ;;  %v267_v4 = vld [vmem:[%s340_s0] sm:$0xff]   ;;  %v264_v6 = vld [vmem:[%s339_s1 + $0x28] sm:$0xff]  }
   0x3   :  { %240 = vmatpush3.bf16.msra.mxu0 %v259_v0  ;;  %255 = vmatprep.mubr.bf16.mxu0 %v267_v4  ;;  %v263_v5 = vld [vmem:[%s339_s1 + $0x20] sm:$0xff]   ;;  %v265_v7 = vld [vmem:[%s339_s1 + $0x30] sm:$0xff]   ;;  %v266_v8 = vld [vmem:[%s339_s1 + $0x38] sm:$0xff]  }
   0x4   :  { %241 = vmatprep.subr.bf16.mxu0 %v260_v1  ;;  %v268_v9 = vld [vmem:[%s340_s0 + $0x8] sm:$0xff]   ;;  %v190_v10 = vld [vmem:[%s341_s2] ss:$0 sm:$0xff] }
   0x5   :  { %v227_v11 = vld [vmem:[%s342_s3 + $0x8] sm:$0xff]   ;;  %v210_v12 = vld [vmem:[%s342_s3] sm:$0xff]  }
   0x6   :  { %v215_v15 = vunpack.c.l.bf16 %v227_v11  ;;  %v216_v17 = vunpack.c.h.bf16 %v227_v11  ;;  %v211_v19 = vunpack.c.l.bf16 %v210_v12  ;;  %v212_v21 = vunpack.c.h.bf16 %v210_v12 }
   0x7   :  { %242 = vmatpush3.bf16.msra.mxu0 %v260_v1 }
   0x8   :  { %243 = vmatprep.subr.bf16.mxu0 %v261_v2 }
   0xb   :  { %244 = vmatpush3.bf16.msra.mxu0 %v261_v2 }
   0xc   :  { %245 = vmatprep.subr.bf16.mxu0 %v262_v3 }
   0xf   :  { %246 = vmatpush3.bf16.msra.mxu0 %v262_v3 }
  0x10   :  { %247 = vmatprep.subr.bf16.mxu0 %v263_v5 }
  0x13   :  { %248 = vmatpush3.bf16.msra.mxu0 %v263_v5 }
  0x14   :  { %249 = vmatprep.subr.bf16.mxu0 %v264_v6 }
  0x17   :  { %250 = vmatpush3.bf16.msra.mxu0 %v264_v6 }
  0x18   :  { %251 = vmatprep.subr.bf16.mxu0 %v265_v7 }
  0x1b   :  { %252 = vmatpush3.bf16.msra.mxu0 %v265_v7 }
  0x1c   :  { %253 = vmatprep.subr.bf16.mxu0 %v266_v8 }
  0x1f   :  { %254 = vmatpush3.bf16.msra.mxu0 %v266_v8 }
  0x22   :  { %256 = vmatmul.mubr.bf16.vlgmr.msra.gmra.mrb[0].mxu0 %v268_v9 }
  0xf5   :  { %v257_v13 = vpop.f32.mrb[0].mxu0 }
  0xf6   :  { %v148_v14 = vadd.f32 %v257_v13, %v190_v10  ;;  %v139_v16 = vpop.f32.mrb[1].mxu0 }
  0xf7   :  { %v140_v18 = vadd.f32 %v190_v10, %v139_v16  ;;  %v258_v20 = vpop.f32.mrb[2].mxu0 }
  0xf8   :  { %v151_v22 = vadd.f32 %v258_v20, %v190_v10  ;;  %v142_v23 = vpop.f32.mrb[3].mxu0  ;;  %v164_v25 = vadd.f32 %v215_v15, %v148_v14 }
  0xf9   :  { %v143_v24 = vadd.f32 %v190_v10, %v142_v23  ;;  %v162_v27 = vadd.f32 %v211_v19, %v140_v18 }
  0xfa   :  { %v165_v26 = vadd.f32 %v216_v17, %v151_v22 }
  0xfb   :  { %v163_v28 = vadd.f32 %v212_v21, %v143_v24 }
  0xfc   :  { %v225_v29 = vpack.c.bf16 %v165_v26, %v164_v25 }
  0xfd   :  { %v220_v30 = vpack.c.bf16 %v163_v28, %v162_v27 }
  0xfe   :  { %228 = vst [vmem:[%s343_s4 + $0x8] sm:$0xff] %v225_v29  }
  0xff   :  { %221 = vst [vmem:[%s343_s4] sm:$0xff] %v220_v30  }

// kernel: gpt_forward.9
= control target key start
LH: loop header
LB: loop body
LE: loop exit
PB: predicated region body
PF: predicated region fallthrough
CT: control target
= control target key end

     0   :  { %v559_v41 = vmov 0   ;;  %s721_s0 = inlined_call_operand.vmem [shape: bf16[32,128], index: 0, kind: input, shape index: {}]   ;;  %s722_s3 = inlined_call_operand.vmem [shape: bf16[128,384], index: 3, kind: input, shape index: {}]   ;;  %s723_s1 = inlined_call_operand.vmem [shape: f32[1,128], index: 1, kind: input, shape index: {}]   ;;  %s724_s2 = inlined_call_operand.vmem [shape: f32[1,128], index: 2, kind: input, shape index: {}]   ;;  %s725_s4 = inlined_call_operand.vmem [shape: f32[1,384], index: 4, kind: input, shape index: {}]   ;;  %s726_s5 = inlined_call_operand.vmem [shape: bf16[32,384], index: 5, kind: output, shape index: {}]  }
   0x1   :  { %v480_v0 = vld [vmem:[%s721_s0] sm:$0xff]   ;;  %v487_v1 = vld [vmem:[%s721_s0 + $0x8] sm:$0xff]   ;;  %v529_v29 = vld [vmem:[%s722_s3 + $0x30] ss:$12 sps:$4 sm:$0xff]   ;;  %315 = vmatprep.mubr.bf16.mxu0 %v559_v41 }
   0x2   :  { %v481_v2 = vunpack.c.l.bf16 %v480_v0  ;;  %v485_v3 = vunpack.c.l.bf16 %v487_v1  ;;  %v482_v4 = vunpack.c.h.bf16 %v480_v0  ;;  %v486_v5 = vunpack.c.h.bf16 %v487_v1  ;;  %v519_v6 = vld [vmem:[%s722_s3 + $0x4] ss:$12 sps:$4 sm:$0xff]   ;;  %v521_v7 = vld [vmem:[%s722_s3] ss:$12 sps:$4 sm:$0xff]   ;;  %v522_v8 = vld [vmem:[%s722_s3 + $0x1c] ss:$12 sps:$4 sm:$0xff]  }
   0x3   :  { %283 = vmatprep.subr.bf16.mxu0 %v519_v6  ;;  %v524_v9 = vld [vmem:[%s722_s3 + $0x8] ss:$12 sps:$4 sm:$0xff]   ;;  %v525_v26 = vld [vmem:[%s722_s3 + $0x18] ss:$12 sps:$4 sm:$0xff]   ;;  %v528_v28 = vld [vmem:[%s722_s3 + $0x20] ss:$12 sps:$4 sm:$0xff]  }
   0x4   :  { %35 = vadd.xlane.f32.xlu0 %v481_v2  ;;  %39 = vadd.xlane.f32.xlu1 %v485_v3  ;;  %v526_v27 = vld [vmem:[%s722_s3 + $0x34] ss:$12 sps:$4 sm:$0xff]   ;;  %v530_v30 = vld [vmem:[%s722_s3 + $0x4c] ss:$12 sps:$4 sm:$0xff]   ;;  %v534_v33 = vld [vmem:[%s722_s3 + $0x64] ss:$12 sps:$4 sm:$0xff]  }
   0x5   :  { %284 = vmatpush1.bf16.msra.mxu0 %v521_v7  ;;  %498 = vmatprep.subr.bf16.mxu1 %v524_v9  ;;  %v532_v31 = vld [vmem:[%s722_s3 + $0x38] ss:$12 sps:$4 sm:$0xff]   ;;  %v533_v32 = vld [vmem:[%s722_s3 + $0x48] ss:$12 sps:$4 sm:$0xff]   ;;  %v536_v34 = vld [vmem:[%s722_s3 + $0x50] ss:$12 sps:$4 sm:$0xff]  }
   0x6   :  { %285 = vmatprep.subr.bf16.mxu0 %v522_v8  ;;  %499 = vmatpush3.bf16.msra.mxu1 %v524_v9  ;;  %v537_v35 = vld [vmem:[%s722_s3 + $0x60] ss:$12 sps:$4 sm:$0xff]   ;;  %v538_v36 = vld [vmem:[%s722_s3 + $0x7c] ss:$12 sps:$4 sm:$0xff]   ;;  %v541_v38 = vld [vmem:[%s722_s3 + $0x78] ss:$12 sps:$4 sm:$0xff]  }
   0x7   :  { %500 = vmatprep.subr.bf16.mxu1 %v528_v28  ;;  %v540_v37 = vld [vmem:[%s722_s3 + $0x68] ss:$12 sps:$4 sm:$0xff]   ;;  %v544_v40 = vld [vmem:[%s722_s3 + $0x80] ss:$12 sps:$4 sm:$0xff]   ;;  %v545_v42 = vld [vmem:[%s722_s3 + $0x90] ss:$12 sps:$4 sm:$0xff]  }
   0x8   :  { %37 = vadd.xlane.f32.xlu0 %v482_v4  ;;  %41 = vadd.xlane.f32.xlu1 %v486_v5  ;;  %v542_v39 = vld [vmem:[%s722_s3 + $0x94] ss:$12 sps:$4 sm:$0xff]   ;;  %v546_v43 = vld [vmem:[%s722_s3 + $0xac] ss:$12 sps:$4 sm:$0xff]   ;;  %v550_v46 = vld [vmem:[%s722_s3 + $0xb0] ss:$12 sps:$4 sm:$0xff]  }
   0x9   :  { %286 = vmatpush1.bf16.msra.mxu0 %v525_v26  ;;  %v548_v44 = vld [vmem:[%s722_s3 + $0x98] ss:$12 sps:$4 sm:$0xff]   ;;  %v549_v45 = vld [vmem:[%s722_s3 + $0xa8] ss:$12 sps:$4 sm:$0xff]   ;;  %v437_v61 = vld [vmem:[%s723_s1] ss:$0 sm:$0xff] }
   0xa   :  { %287 = vmatprep.subr.bf16.mxu0 %v526_v27  ;;  %501 = vmatpush3.bf16.msra.mxu1 %v528_v28 }
   0xb   :  { %502 = vmatprep.subr.bf16.mxu1 %v532_v31 }
   0xd   :  { %288 = vmatpush1.bf16.msra.mxu0 %v529_v29 }
   0xe   :  { %289 = vmatprep.subr.bf16.mxu0 %v530_v30  ;;  %503 = vmatpush3.bf16.msra.mxu1 %v532_v31 }
   0xf   :  { %504 = vmatprep.subr.bf16.mxu1 %v536_v34 }
  0x11   :  { %290 = vmatpush1.bf16.msra.mxu0 %v533_v32 }
  0x12   :  { %291 = vmatprep.subr.bf16.mxu0 %v534_v33  ;;  %505 = vmatpush3.bf16.msra.mxu1 %v536_v34 }
  0x13   :  { %506 = vmatprep.subr.bf16.mxu1 %v540_v37 }
  0x15   :  { %292 = vmatpush1.bf16.msra.mxu0 %v537_v35 }
  0x16   :  { %293 = vmatprep.subr.bf16.mxu0 %v538_v36  ;;  %507 = vmatpush3.bf16.msra.mxu1 %v540_v37 }
  0x17   :  { %508 = vmatprep.subr.bf16.mxu1 %v544_v40 }
  0x19   :  { %294 = vmatpush1.bf16.msra.mxu0 %v541_v38 }
  0x1a   :  { %295 = vmatprep.subr.bf16.mxu0 %v542_v39  ;;  %509 = vmatpush3.bf16.msra.mxu1 %v544_v40 }
  0x1b   :  { %510 = vmatprep.subr.bf16.mxu1 %v548_v44 }
  0x1d   :  { %296 = vmatpush1.bf16.msra.mxu0 %v545_v42 }
  0x1e   :  { %297 = vmatprep.subr.bf16.mxu0 %v546_v43  ;;  %511 = vmatpush3.bf16.msra.mxu1 %v548_v44 }
  0x1f   :  { %512 = vmatprep.subr.bf16.mxu1 %v550_v46 }
  0x21   :  { %298 = vmatpush1.bf16.msra.mxu0 %v549_v45 }
  0x22   :  { %513 = vmatpush3.bf16.msra.mxu1 %v550_v46 }
  0x91   :  { %v36_v10 = vpop.xlane.xlu0 %35  ;;  %v40_v11 = vpop.xlane.xlu1 %39 }
  0x92   :  { %v44_v12 = vmul.f32 0.0078125, %v36_v10  ;;  %v46_v13 = vmul.f32 0.0078125, %v40_v11 }
  0x94   :  { %v608_v14 = vsub.f32 %v481_v2, %v44_v12  ;;  %v610_v15 = vsub.f32 %v485_v3, %v46_v13  ;;  %v438_v2 = vld [vmem:[%s724_s2] ss:$0 sm:$0xff] }
  0x95   :  { %v38_v16 = vpop.xlane.xlu0 %37  ;;  %v42_v17 = vpop.xlane.xlu1 %41 }
  0x96   :  { %v45_v18 = vmul.f32 0.0078125, %v38_v16  ;;  %v52_v19 = vmul.f32 %v608_v14, %v608_v14  ;;  %v47_v20 = vmul.f32 0.0078125, %v42_v17  ;;  %v54_v23 = vmul.f32 %v610_v15, %v610_v15 }
  0x97   :  { %v140_v16 = vlaneseq }
  0x98   :  { %v614_v21 = vsub.f32 %v482_v4, %v45_v18  ;;  %56 = vadd.xlane.f32.xlu0 %v52_v19  ;;  %v616_v22 = vsub.f32 %v486_v5, %v47_v20  ;;  %v138_v18 = vld [vmem:[%s725_s4] sm:$0x7] }
  0x99   :  { %v141_v17 = vshrl.u32 %v140_v16, 7 }
  0x9a   :  { %v53_v24 = vmul.f32 %v614_v21, %v614_v21  ;;  %v55_v25 = vmul.f32 %v616_v22, %v616_v22 }
  0x9b   :  { %v146_v19 = vsub.s32 1, %v141_v17 }
  0x9c   :  { %60 = vadd.xlane.f32.xlu0 %v54_v23  ;;  %58 = vadd.xlane.f32.xlu1 %v53_v24 }
  0xa0   :  { %62 = vadd.xlane.f32.xlu1 %v55_v25 }
 0x125   :  { %v57_v47 = vpop.xlane.xlu0 %56 }
 0x126   :  { %v64_v48 = vmul.f32 0.0078125, %v57_v47 }
 0x128   :  { %v68_v49 = vadd.f32 1e-05, %v64_v48 }
 0x129   :  { %v59_v50 = vpop.xlane.xlu1 %58  ;;  %v61_v51 = vpop.xlane.xlu0 %60 }
 0x12a   :  { %551 = vrsqrt.f32 %v68_v49  ;;  %v65_v52 = vmul.f32 0.0078125, %v59_v50  ;;  %v66_v53 = vmul.f32 0.0078125, %v61_v51 }
 0x12c   :  { %v69_v54 = vadd.f32 1e-05, %v65_v52  ;;  %v70_v55 = vadd.f32 1e-05, %v66_v53 }
 0x12d   :  { %v63_v56 = vpop.xlane.xlu1 %62 }
 0x12e   :  { %553 = vrsqrt.f32 %v69_v54  ;;  %v67_v57 = vmul.f32 0.0078125, %v63_v56 }
 0x12f   :  { %555 = vrsqrt.f32 %v70_v55 }
 0x130   :  { %v71_v58 = vadd.f32 1e-05, %v67_v57 }
 0x132   :  { %557 = vrsqrt.f32 %v71_v58 }
 0x134   :  { %v552_v59 = vpop.eup %551 }
 0x135   :  { %v76_v60 = vmul.f32 %v552_v59, %v608_v14 }
 0x137   :  { %v86_v1 = vmul.f32 %v437_v61, %v76_v60 }
 0x138   :  { %v554_v62 = vpop.eup %553 }
 0x139   :  { %v556_v63 = vpop.eup %555  ;;  %v77_v0 = vmul.f32 %v554_v62, %v614_v21  ;;  %v96_v6 = vadd.f32 %v438_v2, %v86_v1  ;;  %v150_v21 = vsub.s32 2, %v141_v17 }
 0x13a   :  { %v78_v3 = vmul.f32 %v556_v63, %v610_v15  ;;  %v142_v15 = vsub.s32 0, %v141_v17 }
 0x13b   :  { %v87_v4 = vmul.f32 %v437_v61, %v77_v0  ;;  %v151_v26 = vrot.slane %v138_v18, %v150_v21 }
 0x13c   :  { %v558_v5 = vpop.eup %557  ;;  %v88_v9 = vmul.f32 %v437_v61, %v78_v3  ;;  %v143_v20 = vrot.slane %v138_v18, %v142_v15 }
 0x13d   :  { %v97_v7 = vadd.f32 %v438_v2, %v87_v4  ;;  %v79_v8 = vmul.f32 %v558_v5, %v616_v22  ;;  %v147_v22 = vrot.slane %v138_v18, %v146_v19 }
 0x13e   :  { %v98_v12 = vadd.f32 %v438_v2, %v88_v9 }
 0x13f   :  { %v100_v10 = vpack.c.bf16 %v97_v7, %v96_v6  ;;  %v89_v11 = vmul.f32 %v437_v61, %v79_v8 }
 0x141   :  { %316 = vmatmul.mubr.bf16.vlgmr.msra.gmra.mrb[0].mxu0 %v100_v10  ;;  %514 = vmatprep.mubr.bf16.mxu1 %v100_v10  ;;  %v99_v13 = vadd.f32 %v438_v2, %v89_v11 }
 0x142   :  { %325 = vmatprep.mubr.bf16.mxu0 %v559_v41 }
 0x143   :  { %v101_v14 = vpack.c.bf16 %v99_v13, %v98_v12 }
 0x145   :  { %515 = vmatmul.mubr.bf16.vlgmr.msra.gmra.mrb[0].mxu1 %v101_v14 }
 0x149   :  { %326 = vmatmul.mubr.bf16.gmra.mrb[4].mxu0 %v101_v14 }
 0x214   :  { %v317_v23 = vpop.f32.mrb[0].mxu0 }
 0x215   :  { %v318_v24 = vadd.f32 %v317_v23, %v143_v20  ;;  %v319_v25 = vpop.f32.mrb[1].mxu0 }
 0x216   :  { %v320_v27 = vadd.f32 %v319_v25, %v147_v22  ;;  %v321_v28 = vpop.f32.mrb[2].mxu0 }
 0x217   :  { %v322_v29 = vadd.f32 %v321_v28, %v143_v20  ;;  %v323_v30 = vpop.f32.mrb[3].mxu0 }
 0x218   :  { %v471_v31 = vpack.c.bf16 %v320_v27, %v318_v24  ;;  %v324_v32 = vadd.f32 %v323_v30, %v147_v22  ;;  %v516_v33 = vpop.f32.mrb[0].mxu1 }
 0x219   :  { %v379_v34 = vadd.f32 %v516_v33, %v151_v26  ;;  %v370_v35 = vpop.f32.mrb[1].mxu1 }
 0x21a   :  { %425 = vst [vmem:[%s726_s5] sm:$0xff] %v471_v31  ;;  %v473_v36 = vpack.c.bf16 %v324_v32, %v322_v29  ;;  %v371_v37 = vadd.f32 %v370_v35, %v151_v26  ;;  %v517_v38 = vpop.f32.mrb[2].mxu1 }
 0x21b   :  { %v476_v39 = vpack.c.bf16 %v379_v34, %v379_v34  ;;  %v382_v40 = vadd.f32 %v517_v38, %v151_v26  ;;  %v373_v41 = vpop.f32.mrb[3].mxu1 }
 0x21c   :  { %427 = vst [vmem:[%s726_s5 + $0xc] sm:$0xff] %v473_v36  ;;  %v472_v42 = vpack.c.bf16 %v371_v37, %v371_v37  ;;  %v374_v43 = vadd.f32 %v373_v41, %v151_v26  ;;  %v327_v44 = vpop.f32.mrb[4].mxu0 }
 0x21d   :  { %430 = vst [vmem:[%s726_s5 + $0x20] sm:$0xf] %v476_v39  ;;  %v478_v45 = vpack.c.bf16 %v382_v40, %v382_v40  ;;  %v328_v46 = vadd.f32 %v327_v44, %v143_v20  ;;  %v329_v47 = vpop.f32.mrb[5].mxu0 }
 0x21e   :  { %426 = vst [vmem:[%s726_s5 + $0x8] sm:$0xf] %v472_v42  ;;  %v474_v48 = vpack.c.bf16 %v374_v43, %v374_v43  ;;  %v330_v49 = vadd.f32 %v329_v47, %v147_v22  ;;  %v331_v50 = vpop.f32.mrb[6].mxu0 }
 0x21f   :  { %432 = vst [vmem:[%s726_s5 + $0x2c] sm:$0xf] %v478_v45  ;;  %v332_v51 = vadd.f32 %v331_v50, %v143_v20  ;;  %v333_v52 = vpop.f32.mrb[7].mxu0 }
 0x220   :  { %428 = vst [vmem:[%s726_s5 + $0x14] sm:$0xf] %v474_v48  ;;  %v475_v53 = vpack.c.bf16 %v330_v49, %v328_v46  ;;  %v334_v54 = vadd.f32 %v333_v52, %v147_v22 }
 0x222   :  { %429 = vst [vmem:[%s726_s5 + $0x18] sm:$0xff] %v475_v53  ;;  %v477_v55 = vpack.c.bf16 %v334_v54, %v332_v51 }
 0x224   :  { %431 = vst [vmem:[%s726_s5 + $0x24] sm:$0xff] %v477_v55 }

// kernel: gpt_forward.12
= control target key start
LH: loop header
LB: loop body
LE: loop exit
PB: predicated region body
PF: predicated region fallthrough
CT: control target
= control target key end

     0   :  { %v1292_v52 = vmov 0   ;;  %s1700_s0 = inlined_call_operand.vmem [shape: bf16[32,128], index: 0, kind: input, shape index: {}, may-alias: {0,7}]   ;;  %s1701_s3 = inlined_call_operand.vmem [shape: bf16[128,512], index: 3, kind: input, shape index: {}]   ;;  %s1702_s1 = inlined_call_operand.vmem [shape: f32[1,128], index: 1, kind: input, shape index: {}]   ;;  %s1703_s2 = inlined_call_operand.vmem [shape: f32[1,128], index: 2, kind: input, shape index: {}]   ;;  %s1704_s5 = inlined_call_operand.vmem [shape: bf16[512,128], index: 5, kind: input, shape index: {}]   ;;  %s1705_s4 = inlined_call_operand.vmem [shape: f32[1,512], index: 4, kind: input, shape index: {}]   ;;  %s1706_s6 = inlined_call_operand.vmem [shape: f32[1,128], index: 6, kind: input, shape index: {}]   ;;  %s1707_s7 = inlined_call_operand.vmem [shape: bf16[32,128], index: 7, kind: input, shape index: {}, may-alias: {0,7}]   ;;  %s1708_s8 = inlined_call_operand.vmem [shape: bf16[32,128], index: 8, kind: output, shape index: {}]  }
   0x1   :  { %v1087_v0 = vld [vmem:[%s1700_s0] sm:$0xff]   ;;  %v1112_v1 = vld [vmem:[%s1700_s0 + $0x8] sm:$0xff]   ;;  %365 = vmatprep.mubr.bf16.mxu0 %v1292_v52  ;;  %418 = vmatprep.mubr.bf16.mxu1 %v1292_v52 }
   0x2   :  { %v1088_v2 = vunpack.c.l.bf16 %v1087_v0  ;;  %v1092_v3 = vunpack.c.l.bf16 %v1112_v1  ;;  %v1089_v4 = vunpack.c.h.bf16 %v1087_v0  ;;  %v1093_v5 = vunpack.c.h.bf16 %v1112_v1  ;;  %v1172_v6 = vld [vmem:[%s1701_s3 + $0x4] ss:$16 sps:$4 sm:$0xff]   ;;  %v1174_v7 = vld [vmem:[%s1701_s3 + $0xc] ss:$16 sps:$4 sm:$0xff]   ;;  %v1176_v8 = vld [vmem:[%s1701_s3] ss:$16 sps:$4 sm:$0xff]  }
   0x3   :  { %333 = vmatprep.subr.bf16.mxu0 %v1172_v6  ;;  %v1177_v9 = vld [vmem:[%s1701_s3 + $0x8] ss:$16 sps:$4 sm:$0xff]   ;;  %386 = vmatprep.subr.bf16.mxu1 %v1174_v7  ;;  %v1178_v10 = vld [vmem:[%s1701_s3 + $0x24] ss:$16 sps:$4 sm:$0xff]   ;;  %v1180_v11 = vld [vmem:[%s1701_s3 + $0x2c] ss:$16 sps:$4 sm:$0xff]  }
   0x4   :  { %44 = vadd.xlane.f32.xlu0 %v1088_v2  ;;  %48 = vadd.xlane.f32.xlu1 %v1092_v3  ;;  %v1182_v28 = vld [vmem:[%s1701_s3 + $0x20] ss:$16 sps:$4 sm:$0xff]   ;;  %v1183_v29 = vld [vmem:[%s1701_s3 + $0x28] ss:$16 sps:$4 sm:$0xff]   ;;  %v1184_v30 = vld [vmem:[%s1701_s3 + $0x44] ss:$16 sps:$4 sm:$0xff]  }
   0x5   :  { %334 = vmatpush1.bf16.msra.mxu0 %v1176_v8  ;;  %387 = vmatpush1.bf16.msra.mxu1 %v1177_v9  ;;  %v1186_v31 = vld [vmem:[%s1701_s3 + $0x4c] ss:$16 sps:$4 sm:$0xff]   ;;  %v1188_v32 = vld [vmem:[%s1701_s3 + $0x40] ss:$16 sps:$4 sm:$0xff]   ;;  %v1189_v33 = vld [vmem:[%s1701_s3 + $0x48] ss:$16 sps:$4 sm:$0xff]  }
   0x6   :  { %335 = vmatprep.subr.bf16.mxu0 %v1178_v10  ;;  %388 = vmatprep.subr.bf16.mxu1 %v1180_v11  ;;  %v1190_v34 = vld [vmem:[%s1701_s3 + $0x64] ss:$16 sps:$4 sm:$0xff]   ;;  %v1192_v35 = vld [vmem:[%s1701_s3 + $0x6c] ss:$16 sps:$4 sm:$0xff]   ;;  %v1194_v36 = vld [vmem:[%s1701_s3 + $0x60] ss:$16 sps:$4 sm:$0xff]  }
   0x7   :  { %v1195_v37 = vld [vmem:[%s1701_s3 + $0x68] ss:$16 sps:$4 sm:$0xff]   ;;  %v1196_v38 = vld [vmem:[%s1701_s3 + $0x84] ss:$16 sps:$4 sm:$0xff]   ;;  %v1198_v39 = vld [vmem:[%s1701_s3 + $0x8c] ss:$16 sps:$4 sm:$0xff]  }
   0x8   :  { %46 = vadd.xlane.f32.xlu0 %v1089_v4  ;;  %50 = vadd.xlane.f32.xlu1 %v1093_v5  ;;  %v1200_v40 = vld [vmem:[%s1701_s3 + $0x80] ss:$16 sps:$4 sm:$0xff]   ;;  %v1201_v41 = vld [vmem:[%s1701_s3 + $0x88] ss:$16 sps:$4 sm:$0xff]   ;;  %v1202_v42 = vld [vmem:[%s1701_s3 + $0xa4] ss:$16 sps:$4 sm:$0xff]  }
   0x9   :  { %336 = vmatpush1.bf16.msra.mxu0 %v1182_v28  ;;  %389 = vmatpush1.bf16.msra.mxu1 %v1183_v29  ;;  %v1204_v43 = vld [vmem:[%s1701_s3 + $0xac] ss:$16 sps:$4 sm:$0xff]   ;;  %v1206_v44 = vld [vmem:[%s1701_s3 + $0xa0] ss:$16 sps:$4 sm:$0xff]   ;;  %v1207_v45 = vld [vmem:[%s1701_s3 + $0xa8] ss:$16 sps:$4 sm:$0xff]  }
   0xa   :  { %337 = vmatprep.subr.bf16.mxu0 %v1184_v30  ;;  %390 = vmatprep.subr.bf16.mxu1 %v1186_v31  ;;  %v1208_v46 = vld [vmem:[%s1701_s3 + $0xc4] ss:$16 sps:$4 sm:$0xff]   ;;  %v1210_v47 = vld [vmem:[%s1701_s3 + $0xcc] ss:$16 sps:$4 sm:$0xff]   ;;  %v1212_v48 = vld [vmem:[%s1701_s3 + $0xc0] ss:$16 sps:$4 sm:$0xff]  }
   0xb   :  { %v1213_v49 = vld [vmem:[%s1701_s3 + $0xc8] ss:$16 sps:$4 sm:$0xff]   ;;  %v1214_v50 = vld [vmem:[%s1701_s3 + $0xe4] ss:$16 sps:$4 sm:$0xff]   ;;  %v1216_v51 = vld [vmem:[%s1701_s3 + $0xec] ss:$16 sps:$4 sm:$0xff]  }
   0xc   :  { %v1218_v53 = vld [vmem:[%s1701_s3 + $0xe0] ss:$16 sps:$4 sm:$0xff]   ;;  %v1219_v54 = vld [vmem:[%s1701_s3 + $0xe8] ss:$16 sps:$4 sm:$0xff]  }
   0xd   :  { %338 = vmatpush1.bf16.msra.mxu0 %v1188_v32  ;;  %391 = vmatpush1.bf16.msra.mxu1 %v1189_v33  ;;  %v1012_v10 = vld [vmem:[%s1703_s2] ss:$0 sm:$0xff]  ;;  %v1225_v28 = vld [vmem:[%s1704_s5 + $0xc8] sm:$0xff]   ;;  %v1228_v31 = vld [vmem:[%s1704_s5 + $0x50] sm:$0xff]  }
   0xe   :  { %339 = vmatprep.subr.bf16.mxu0 %v1190_v34  ;;  %392 = vmatprep.subr.bf16.mxu1 %v1192_v35  ;;  %v1226_v29 = vld [vmem:[%s1704_s5 + $0x8] sm:$0xff]   ;;  %v1229_v32 = vld [vmem:[%s1704_s5 + $0xd0] sm:$0xff]   ;;  %v1232_v35 = vld [vmem:[%s1704_s5 + $0x58] sm:$0xff]  }
   0xf   :  { %v1227_v30 = vld [vmem:[%s1704_s5 + $0x88] sm:$0xff]   ;;  %v1230_v33 = vld [vmem:[%s1704_s5 + $0x10] sm:$0xff]  }
  0x10   :  { %v1231_v34 = vld [vmem:[%s1704_s5 + $0x90] sm:$0xff]  }
  0x11   :  { %340 = vmatpush1.bf16.msra.mxu0 %v1194_v36  ;;  %393 = vmatpush1.bf16.msra.mxu1 %v1195_v37  ;;  %v1233_v36 = vld [vmem:[%s1704_s5 + $0xd8] sm:$0xff]  }
  0x12   :  { %341 = vmatprep.subr.bf16.mxu0 %v1196_v38  ;;  %394 = vmatprep.subr.bf16.mxu1 %v1198_v39  ;;  %v1234_v37 = vld [vmem:[%s1704_s5 + $0x18] sm:$0xff]   ;;  %v1236_v39 = vld [vmem:[%s1704_s5 + $0x60] sm:$0xff]  }
  0x13   :  { %v1235_v38 = vld [vmem:[%s1704_s5 + $0x98] sm:$0xff]  }
  0x15   :  { %342 = vmatpush1.bf16.msra.mxu0 %v1200_v40  ;;  %395 = vmatpush1.bf16.msra.mxu1 %v1201_v41  ;;  %v1237_v40 = vld [vmem:[%s1704_s5 + $0xe0] sm:$0xff]  }
  0x16   :  { %343 = vmatprep.subr.bf16.mxu0 %v1202_v42  ;;  %396 = vmatprep.subr.bf16.mxu1 %v1204_v43  ;;  %v1238_v41 = vld [vmem:[%s1704_s5 + $0x20] sm:$0xff]   ;;  %v1240_v43 = vld [vmem:[%s1704_s5 + $0x68] sm:$0xff]  }
  0x17   :  { %v1239_v42 = vld [vmem:[%s1704_s5 + $0xa0] sm:$0xff]  }
  0x19   :  { %344 = vmatpush1.bf16.msra.mxu0 %v1206_v44  ;;  %397 = vmatpush1.bf16.msra.mxu1 %v1207_v45  ;;  %v1241_v44 = vld [vmem:[%s1704_s5 + $0xe8] sm:$0xff]  }
  0x1a   :  { %345 = vmatprep.subr.bf16.mxu0 %v1208_v46  ;;  %398 = vmatprep.subr.bf16.mxu1 %v1210_v47  ;;  %v1242_v45 = vld [vmem:[%s1704_s5 + $0x28] sm:$0xff]   ;;  %v1244_v47 = vld [vmem:[%s1704_s5 + $0x70] sm:$0xff]  }
  0x1b   :  { %v1243_v46 = vld [vmem:[%s1704_s5 + $0xa8] sm:$0xff]  }
  0x1d   :  { %346 = vmatpush1.bf16.msra.mxu0 %v1212_v48  ;;  %399 = vmatpush1.bf16.msra.mxu1 %v1213_v49  ;;  %v1245_v48 = vld [vmem:[%s1704_s5 + $0xf0] sm:$0xff]  }
  0x1e   :  { %347 = vmatprep.subr.bf16.mxu0 %v1214_v50  ;;  %400 = vmatprep.subr.bf16.mxu1 %v1216_v51  ;;  %v1246_v49 = vld [vmem:[%s1704_s5 + $0x30] sm:$0xff]   ;;  %v1248_v51 = vld [vmem:[%s1704_s5 + $0x78] sm:$0xff]  }
  0x1f   :  { %v1247_v50 = vld [vmem:[%s1704_s5 + $0xb0] sm:$0xff]  }
  0x21   :  { %348 = vmatpush1.bf16.msra.mxu0 %v1218_v53  ;;  %401 = vmatpush1.bf16.msra.mxu1 %v1219_v54  ;;  %v1250_v53 = vld [vmem:[%s1704_s5 + $0x38] sm:$0xff]  }
  0x22   :  { %v1251_v54 = vld [vmem:[%s1704_s5 + $0xb8] sm:$0xff]  }
  0x91   :  { %v45_v12 = vpop.xlane.xlu0 %44  ;;  %v49_v13 = vpop.xlane.xlu1 %48 }
  0x92   :  { %v53_v14 = vmul.f32 0.0078125, %v45_v12  ;;  %v55_v15 = vmul.f32 0.0078125, %v49_v13 }
  0x94   :  { %v1362_v16 = vsub.f32 %v1088_v2, %v53_v14  ;;  %v1364_v17 = vsub.f32 %v1092_v3, %v55_v15 }
  0x95   :  { %v47_v18 = vpop.xlane.xlu0 %46  ;;  %v51_v19 = vpop.xlane.xlu1 %50 }
  0x96   :  { %v54_v20 = vmul.f32 0.0078125, %v47_v18  ;;  %v61_v21 = vmul.f32 %v1362_v16, %v1362_v16  ;;  %v56_v22 = vmul.f32 0.0078125, %v51_v19  ;;  %v63_v25 = vmul.f32 %v1364_v17, %v1364_v17 }
  0x98   :  { %v1368_v23 = vsub.f32 %v1089_v4, %v54_v20  ;;  %65 = vadd.xlane.f32.xlu0 %v61_v21  ;;  %v1370_v24 = vsub.f32 %v1093_v5, %v56_v22  ;;  %v1011_v5 = vld [vmem:[%s1702_s1] ss:$0 sm:$0xff] }
  0x9a   :  { %v62_v26 = vmul.f32 %v1368_v23, %v1368_v23  ;;  %v64_v27 = vmul.f32 %v1370_v24, %v1370_v24 }
  0x9c   :  { %69 = vadd.xlane.f32.xlu0 %v63_v25  ;;  %67 = vadd.xlane.f32.xlu1 %v62_v26  ;;  %v1220_v25 = vld [vmem:[%s1704_s5 + $0x40] sm:$0xff]  }
  0x9d   :  { %1115 = vmatprep.subr.bf16.mxu0 %v1220_v25  ;;  %v1223_v26 = vld [vmem:[%s1704_s5 + $0x80] sm:$0xff]  }
  0xa0   :  { %71 = vadd.xlane.f32.xlu1 %v64_v27  ;;  %v1224_v27 = vld [vmem:[%s1704_s5 + $0x48] sm:$0xff]  }
 0x125   :  { %v66_v55 = vpop.xlane.xlu0 %65 }
 0x126   :  { %v73_v56 = vmul.f32 0.0078125, %v66_v55  ;;  %v153_v55 = vlaneseq }
 0x128   :  { %v77_v57 = vadd.f32 1e-05, %v73_v56  ;;  %v154_v56 = vshrl.u32 %v153_v55, 7 }
 0x129   :  { %v68_v58 = vpop.xlane.xlu1 %67  ;;  %v70_v59 = vpop.xlane.xlu0 %69 }
 0x12a   :  { %1252 = vrsqrt.f32 %v77_v57  ;;  %v74_v60 = vmul.f32 0.0078125, %v68_v58  ;;  %v75_v61 = vmul.f32 0.0078125, %v70_v59  ;;  %v155_v57 = vsub.s32 0, %v154_v56  ;;  %v151_v59 = vld [vmem:[%s1705_s4] sm:$0xf] }
 0x12b   :  { %v163_v58 = vsub.s32 2, %v154_v56 }
 0x12c   :  { %v78_v62 = vadd.f32 1e-05, %v74_v60  ;;  %v79_v63 = vadd.f32 1e-05, %v75_v61  ;;  %v159_v60 = vsub.s32 1, %v154_v56  ;;  %v167_v61 = vsub.s32 3, %v154_v56 }
 0x12d   :  { %v72_v0 = vpop.xlane.xlu1 %71 }
 0x12e   :  { %1254 = vrsqrt.f32 %v78_v62  ;;  %v76_v1 = vmul.f32 0.0078125, %v72_v0  ;;  %v1565_v62 = vrot.slane %v151_v59, %v155_v57  ;;  %v1569_v0 = vrot.slane %v151_v59, %v159_v60 }
 0x12f   :  { %1256 = vrsqrt.f32 %v79_v63  ;;  %v1567_v63 = vrot.slane %v151_v59, %v163_v58 }
 0x130   :  { %v80_v2 = vadd.f32 1e-05, %v76_v1  ;;  %v1571_v1 = vrot.slane %v151_v59, %v167_v61 }
 0x132   :  { %1258 = vrsqrt.f32 %v80_v2 }
 0x134   :  { %v1253_v3 = vpop.eup %1252 }
 0x135   :  { %v85_v4 = vmul.f32 %v1253_v3, %v1362_v16 }
 0x137   :  { %v95_v8 = vmul.f32 %v1011_v5, %v85_v4 }
 0x138   :  { %v1255_v6 = vpop.eup %1254 }
 0x139   :  { %v86_v7 = vmul.f32 %v1255_v6, %v1368_v23  ;;  %v1257_v9 = vpop.eup %1256  ;;  %v105_v13 = vadd.f32 %v1012_v10, %v95_v8 }
 0x13a   :  { %v87_v15 = vmul.f32 %v1257_v9, %v1364_v17  ;;  %v1221_v17 = vld [vmem:[%s1704_s5 + $0xc0] sm:$0xff]  }
 0x13b   :  { %v96_v11 = vmul.f32 %v1011_v5, %v86_v7  ;;  %1143 = vmatprep.subr.bf16.mxu1 %v1221_v17 }
 0x13c   :  { %v1259_v12 = vpop.eup %1258  ;;  %v97_v20 = vmul.f32 %v1011_v5, %v87_v15 }
 0x13d   :  { %v106_v14 = vadd.f32 %v1012_v10, %v96_v11  ;;  %v88_v16 = vmul.f32 %v1259_v12, %v1370_v24  ;;  %v1222_v24 = vld [vmem:[%s1704_s5] sm:$0xff]  }
 0x13e   :  { %v107_v22 = vadd.f32 %v1012_v10, %v97_v20 }
 0x13f   :  { %v109_v18 = vpack.c.bf16 %v106_v14, %v105_v13  ;;  %v98_v19 = vmul.f32 %v1011_v5, %v88_v16 }
 0x141   :  { %366 = vmatmul.mubr.bf16.vlgmr.msra.gmra.mrb[0].mxu0 %v109_v18  ;;  %419 = vmatmul.mubr.bf16.vlgmr.msra.gmra.mrb[0].mxu1 %v109_v18  ;;  %v108_v21 = vadd.f32 %v1012_v10, %v98_v19 }
 0x142   :  { %375 = vmatprep.mubr.bf16.mxu0 %v1292_v52  ;;  %428 = vmatprep.mubr.bf16.mxu1 %v1292_v52  ;;  %v1249_v52 = vld [vmem:[%s1704_s5 + $0xf8] sm:$0xff]  }
 0x143   :  { %v110_v23 = vpack.c.bf16 %v108_v21, %v107_v22  ;;  %1116 = vmatpush3.bf16.msra.mxu0 %v1222_v24  ;;  %1144 = vmatpush3.bf16.msra.mxu1 %v1223_v26 }
 0x144   :  { %1117 = vmatprep.subr.bf16.mxu0 %v1224_v27  ;;  %1145 = vmatprep.subr.bf16.mxu1 %v1225_v28 }
 0x147   :  { %1118 = vmatpush3.bf16.msra.mxu0 %v1226_v29  ;;  %1146 = vmatpush3.bf16.msra.mxu1 %v1227_v30 }
 0x148   :  { %1119 = vmatprep.subr.bf16.mxu0 %v1228_v31  ;;  %1147 = vmatprep.subr.bf16.mxu1 %v1229_v32 }
 0x149   :  { %376 = vmatmul.mubr.bf16.gmra.mrb[4].mxu0 %v110_v23  ;;  %429 = vmatmul.mubr.bf16.gmra.mrb[4].mxu1 %v110_v23 }
 0x14b   :  { %1120 = vmatpush3.bf16.msra.mxu0 %v1230_v33  ;;  %1148 = vmatpush3.bf16.msra.mxu1 %v1231_v34 }
 0x14c   :  { %1121 = vmatprep.subr.bf16.mxu0 %v1232_v35  ;;  %1149 = vmatprep.subr.bf16.mxu1 %v1233_v36 }
 0x14f   :  { %1122 = vmatpush3.bf16.msra.mxu0 %v1234_v37  ;;  %1150 = vmatpush3.bf16.msra.mxu1 %v1235_v38 }
 0x150   :  { %1123 = vmatprep.subr.bf16.mxu0 %v1236_v39  ;;  %1151 = vmatprep.subr.bf16.mxu1 %v1237_v40 }
 0x153   :  { %1124 = vmatpush3.bf16.msra.mxu0 %v1238_v41  ;;  %1152 = vmatpush3.bf16.msra.mxu1 %v1239_v42 }
 0x154   :  { %1125 = vmatprep.subr.bf16.mxu0 %v1240_v43  ;;  %1153 = vmatprep.subr.bf16.mxu1 %v1241_v44 }
 0x157   :  { %1126 = vmatpush3.bf16.msra.mxu0 %v1242_v45  ;;  %1154 = vmatpush3.bf16.msra.mxu1 %v1243_v46 }
 0x158   :  { %1127 = vmatprep.subr.bf16.mxu0 %v1244_v47  ;;  %1155 = vmatprep.subr.bf16.mxu1 %v1245_v48 }
 0x15b   :  { %1128 = vmatpush3.bf16.msra.mxu0 %v1246_v49  ;;  %1156 = vmatpush3.bf16.msra.mxu1 %v1247_v50 }
 0x15c   :  { %1129 = vmatprep.subr.bf16.mxu0 %v1248_v51  ;;  %1157 = vmatprep.subr.bf16.mxu1 %v1249_v52 }
 0x15f   :  { %1130 = vmatpush3.bf16.msra.mxu0 %v1250_v53  ;;  %1158 = vmatpush3.bf16.msra.mxu1 %v1251_v54 }
 0x214   :  { %v367_v2 = vpop.f32.mrb[0].mxu0  ;;  %v420_v3 = vpop.f32.mrb[0].mxu1 }
 0x215   :  { %v368_v4 = vadd.f32 %v367_v2, %v1565_v62  ;;  %v421_v5 = vadd.f32 %v420_v3, %v1567_v63  ;;  %v369_v6 = vpop.f32.mrb[1].mxu0  ;;  %v422_v7 = vpop.f32.mrb[1].mxu1 }
 0x216   :  { %v1576_v8 = vadd.f32 %v369_v6, %v1569_v0  ;;  %v1579_v9 = vadd.f32 %v422_v7, %v1571_v1  ;;  %v371_v10 = vpop.f32.mrb[2].mxu0  ;;  %v424_v11 = vpop.f32.mrb[2].mxu1 }
 0x217   :  { %v1581_v12 = vmul.f32 0.5, %v368_v4  ;;  %v455_v13 = vmul.f32 %v368_v4, %v368_v4  ;;  %v1583_v14 = vmul.f32 0.5, %v421_v5  ;;  %v457_v15 = vmul.f32 %v421_v5, %v421_v5  ;;  %v373_v16 = vpop.f32.mrb[3].mxu0  ;;  %v426_v18 = vpop.f32.mrb[3].mxu1 }
 0x218   :  { %v456_v19 = vmul.f32 %v1576_v8, %v1576_v8  ;;  %v458_v20 = vmul.f32 %v1579_v9, %v1579_v9  ;;  %v372_v21 = vadd.f32 %v371_v10, %v1565_v62  ;;  %v425_v22 = vadd.f32 %v424_v11, %v1567_v63 }
 0x219   :  { %v471_v23 = vmul.f32 %v455_v13, %v368_v4  ;;  %v473_v25 = vmul.f32 %v457_v15, %v421_v5  ;;  %v1592_v17 = vadd.f32 %v373_v16, %v1569_v0  ;;  %v1595_v24 = vadd.f32 %v426_v18, %v1571_v1 }
 0x21a   :  { %v472_v26 = vmul.f32 %v456_v19, %v1576_v8  ;;  %v474_v27 = vmul.f32 %v458_v20, %v1579_v9  ;;  %v1599_v28 = vmul.f32 0.5, %v372_v21  ;;  %v459_v29 = vmul.f32 %v372_v21, %v372_v21 }
 0x21b   :  { %v487_v30 = vmul.f32 0.044715, %v471_v23  ;;  %v489_v31 = vmul.f32 0.044715, %v473_v25  ;;  %v1601_v32 = vmul.f32 0.5, %v425_v22  ;;  %v461_v33 = vmul.f32 %v425_v22, %v425_v22 }
 0x21c   :  { %v488_v34 = vmul.f32 0.044715, %v472_v26  ;;  %v490_v35 = vmul.f32 0.044715, %v474_v27  ;;  %v475_v36 = vmul.f32 %v459_v29, %v372_v21  ;;  %v460_v37 = vmul.f32 %v1592_v17, %v1592_v17  ;;  %v377_v38 = vpop.f32.mrb[4].mxu0  ;;  %v430_v39 = vpop.f32.mrb[4].mxu1 }
 0x21d   :  { %v503_v40 = vadd.f32 %v487_v30, %v368_v4  ;;  %v505_v41 = vadd.f32 %v489_v31, %v421_v5  ;;  %v477_v42 = vmul.f32 %v461_v33, %v425_v22  ;;  %v462_v43 = vmul.f32 %v1595_v24, %v1595_v24  ;;  %v379_v44 = vpop.f32.mrb[5].mxu0  ;;  %v432_v45 = vpop.f32.mrb[5].mxu1 }
 0x21e   :  { %v504_v46 = vadd.f32 %v488_v34, %v1576_v8  ;;  %v506_v47 = vadd.f32 %v490_v35, %v1579_v9  ;;  %v491_v48 = vmul.f32 0.044715, %v475_v36  ;;  %v476_v49 = vmul.f32 %v460_v37, %v1592_v17  ;;  %v381_v50 = vpop.f32.mrb[6].mxu0  ;;  %v434_v51 = vpop.f32.mrb[6].mxu1 }
 0x21f   :  { %v519_v52 = vmul.f32 0.7978846, %v503_v40  ;;  %v521_v53 = vmul.f32 0.7978846, %v505_v41  ;;  %v493_v54 = vmul.f32 0.044715, %v477_v42  ;;  %v478_v55 = vmul.f32 %v462_v43, %v1595_v24 }
 0x220   :  { %v520_v56 = vmul.f32 0.7978846, %v504_v46  ;;  %v522_v57 = vmul.f32 0.7978846, %v506_v47  ;;  %v507_v58 = vadd.f32 %v491_v48, %v372_v21  ;;  %v492_v59 = vmul.f32 0.044715, %v476_v49 }
 0x221   :  { %1260 = vtanh.f32 %v519_v52  ;;  %v509_v60 = vadd.f32 %v493_v54, %v425_v22  ;;  %v494_v61 = vmul.f32 0.044715, %v478_v55  ;;  %v1612_v2 = vadd.f32 %v377_v38, %v1565_v62  ;;  %v383_v3 = vpop.f32.mrb[7].mxu0  ;;  %v436_v4 = vpop.f32.mrb[7].mxu1 }
 0x222   :  { %1262 = vtanh.f32 %v521_v53  ;;  %v523_v5 = vmul.f32 0.7978846, %v507_v58  ;;  %v508_v6 = vadd.f32 %v492_v59, %v1592_v17  ;;  %v1616_v7 = vadd.f32 %v430_v39, %v1567_v63 }
 0x223   :  { %1264 = vtanh.f32 %v520_v56  ;;  %v525_v10 = vmul.f32 0.7978846, %v509_v60  ;;  %v510_v11 = vadd.f32 %v494_v61, %v1595_v24  ;;  %v463_v13 = vmul.f32 %v1612_v2, %v1612_v2 }
 0x224   :  { %1266 = vtanh.f32 %v522_v57  ;;  %v524_v15 = vmul.f32 0.7978846, %v508_v6  ;;  %v465_v16 = vmul.f32 %v1616_v7, %v1616_v7  ;;  %v1624_v18 = vadd.f32 %v379_v44, %v1569_v0 }
 0x225   :  { %1268 = vtanh.f32 %v523_v5  ;;  %v526_v19 = vmul.f32 0.7978846, %v510_v11  ;;  %v479_v20 = vmul.f32 %v463_v13, %v1612_v2  ;;  %v1628_v21 = vadd.f32 %v432_v45, %v1571_v1 }
 0x226   :  { %1270 = vtanh.f32 %v525_v10  ;;  %v481_v22 = vmul.f32 %v465_v16, %v1616_v7  ;;  %v464_v23 = vmul.f32 %v1624_v18, %v1624_v18  ;;  %v1634_v25 = vadd.f32 %v381_v50, %v1565_v62 }
 0x227   :  { %1272 = vtanh.f32 %v524_v15  ;;  %v495_v26 = vmul.f32 0.044715, %v479_v20  ;;  %v466_v27 = vmul.f32 %v1628_v21, %v1628_v21  ;;  %v1639_v29 = vadd.f32 %v434_v51, %v1567_v63 }
 0x228   :  { %1274 = vtanh.f32 %v526_v19  ;;  %v497_v30 = vmul.f32 0.044715, %v481_v22  ;;  %v480_v31 = vmul.f32 %v464_v23, %v1624_v18  ;;  %v467_v33 = vmul.f32 %v1634_v25, %v1634_v25 }
 0x229   :  { %v511_v34 = vadd.f32 %v495_v26, %v1612_v2  ;;  %v482_v62 = vmul.f32 %v466_v27, %v1628_v21  ;;  %v469_v35 = vmul.f32 %v1639_v29, %v1639_v29  ;;  %v1649_v36 = vadd.f32 %v383_v3, %v1569_v0 }
 0x22a   :  { %v513_v63 = vadd.f32 %v497_v30, %v1616_v7  ;;  %v496_v37 = vmul.f32 0.044715, %v480_v31  ;;  %v483_v38 = vmul.f32 %v467_v33, %v1634_v25  ;;  %v1654_v39 = vadd.f32 %v436_v4, %v1571_v1 }
 0x22b   :  { %v1261_v40 = vpop.eup %1260  ;;  %v527_v41 = vmul.f32 0.7978846, %v511_v34  ;;  %v498_v42 = vmul.f32 0.044715, %v482_v62  ;;  %v485_v43 = vmul.f32 %v469_v35, %v1639_v29  ;;  %v468_v44 = vmul.f32 %v1649_v36, %v1649_v36 }
 0x22c   :  { %v1263_v45 = vpop.eup %1262  ;;  %v551_v46 = vadd.f32 1.0, %v1261_v40  ;;  %v529_v0 = vmul.f32 0.7978846, %v513_v63  ;;  %v512_v47 = vadd.f32 %v496_v37, %v1624_v18  ;;  %v499_v48 = vmul.f32 0.044715, %v483_v38 }
 0x22d   :  { %v1265_v49 = vpop.eup %1264  ;;  %v553_v50 = vadd.f32 1.0, %v1263_v45  ;;  %1276 = vtanh.f32 %v527_v41  ;;  %v514_v1 = vadd.f32 %v498_v42, %v1628_v21  ;;  %v501_v51 = vmul.f32 0.044715, %v485_v43 }
 0x22e   :  { %v1267_v52 = vpop.eup %1266  ;;  %v567_v53 = vmul.f32 %v551_v46, %v1581_v12  ;;  %1278 = vtanh.f32 %v529_v0  ;;  %v528_v54 = vmul.f32 0.7978846, %v512_v47  ;;  %v515_v55 = vadd.f32 %v499_v48, %v1634_v25 }
 0x22f   :  { %v1269_v56 = vpop.eup %1268  ;;  %v569_v57 = vmul.f32 %v553_v50, %v1583_v14  ;;  %v530_v58 = vmul.f32 0.7978846, %v514_v1  ;;  %v517_v59 = vadd.f32 %v501_v51, %v1639_v29  ;;  %v484_v60 = vmul.f32 %v468_v44, %v1649_v36 }
 0x230   :  { %v1271_v61 = vpop.eup %1270  ;;  %v555_v3 = vadd.f32 1.0, %v1269_v56  ;;  %1280 = vtanh.f32 %v528_v54  ;;  %v531_v4 = vmul.f32 0.7978846, %v515_v55  ;;  %v470_v5 = vmul.f32 %v1654_v39, %v1654_v39 }
 0x231   :  { %v1273_v12 = vpop.eup %1272  ;;  %v557_v6 = vadd.f32 1.0, %v1271_v61  ;;  %1282 = vtanh.f32 %v530_v58  ;;  %v533_v10 = vmul.f32 0.7978846, %v517_v59  ;;  %v500_v11 = vmul.f32 0.044715, %v484_v60 }
 0x232   :  { %v1275_v13 = vpop.eup %1274  ;;  %v571_v14 = vmul.f32 %v555_v3, %v1599_v28  ;;  %1284 = vtanh.f32 %v531_v4  ;;  %v486_v15 = vmul.f32 %v470_v5, %v1654_v39  ;;  %v440_v16 = vmul.f32 0.5, %v1576_v8 }
 0x233   :  { %v573_v19 = vmul.f32 %v557_v6, %v1601_v32  ;;  %1286 = vtanh.f32 %v533_v10  ;;  %v516_v20 = vadd.f32 %v500_v11, %v1649_v36  ;;  %v444_v22 = vmul.f32 0.5, %v1592_v17 }
 0x234   :  { %v502_v23 = vmul.f32 0.044715, %v486_v15  ;;  %v552_v26 = vadd.f32 1.0, %v1265_v49  ;;  %v556_v27 = vadd.f32 1.0, %v1273_v12  ;;  %v442_v30 = vmul.f32 0.5, %v1579_v9 }
 0x235   :  { %v532_v31 = vmul.f32 0.7978846, %v516_v20  ;;  %v446_v28 = vmul.f32 0.5, %v1595_v24  ;;  %v554_v33 = vadd.f32 1.0, %v1267_v52  ;;  %v558_v34 = vadd.f32 1.0, %v1275_v13 }
 0x236   :  { %v518_v62 = vadd.f32 %v502_v23, %v1654_v39  ;;  %v568_v8 = vmul.f32 %v552_v26, %v440_v16  ;;  %v572_v35 = vmul.f32 %v556_v27, %v444_v22  ;;  %v587_v32 = vpack.c.bf16 %v571_v14, %v567_v53  ;;  %v1095_v23 = vld [vmem:[%s1707_s7] sm:$0xff]  }
 0x237   :  { %v1277_v63 = vpop.eup %1276  ;;  %1288 = vtanh.f32 %v532_v31  ;;  %v570_v37 = vmul.f32 %v554_v33, %v442_v30  ;;  %v574_v38 = vmul.f32 %v558_v34, %v446_v28  ;;  %v589_v17 = vpack.c.bf16 %v573_v19, %v569_v57 }
 0x238   :  { %v1279_v40 = vpop.eup %1278  ;;  %v534_v41 = vmul.f32 0.7978846, %v518_v62  ;;  %v588_v42 = vpack.c.bf16 %v572_v35, %v568_v8  ;;  %v559_v44 = vadd.f32 1.0, %v1277_v63  ;;  %v447_v47 = vmul.f32 0.5, %v1612_v2 }
 0x239   :  { %v590_v43 = vpack.c.bf16 %v574_v38, %v570_v37  ;;  %v561_v46 = vadd.f32 1.0, %v1279_v40  ;;  %v451_v48 = vmul.f32 0.5, %v1634_v25  ;;  %v449_v50 = vmul.f32 0.5, %v1616_v7 }
 0x23a   :  { %v1281_v9 = vpop.eup %1280  ;;  %1290 = vtanh.f32 %v534_v41  ;;  %883 = vmatprep.mubr.bf16.mxu0 %v588_v42  ;;  %v453_v1 = vmul.f32 0.5, %v1639_v29  ;;  %v575_v52 = vmul.f32 %v559_v44, %v447_v47  ;;  %v448_v59 = vmul.f32 0.5, %v1624_v18 }
 0x23b   :  { %v1283_v24 = vpop.eup %1282  ;;  %932 = vmatprep.mubr.bf16.mxu1 %v590_v43  ;;  %884 = vmatmul.mubr.bf16.vlgmr.msra.gmra.mrb[8].mxu0 %v587_v32  ;;  %v560_v54 = vadd.f32 1.0, %v1281_v9  ;;  %v577_v55 = vmul.f32 %v561_v46, %v449_v50  ;;  %v452_v60 = vmul.f32 0.5, %v1649_v36  ;;  %v450_v29 = vmul.f32 0.5, %v1628_v21 }
 0x23c   :  { %v1285_v45 = vpop.eup %1284  ;;  %933 = vmatmul.mubr.bf16.vlgmr.msra.gmra.mrb[8].mxu1 %v589_v17  ;;  %v562_v25 = vadd.f32 1.0, %v1283_v24  ;;  %v454_v5 = vmul.f32 0.5, %v1654_v39  ;;  %v1077_v39 = vld [vmem:[%s1706_s6] ss:$0 sm:$0xff]  ;;  %v1096_v33 = vunpack.c.l.bf16 %v1095_v23  ;;  %v1097_v62 = vunpack.c.h.bf16 %v1095_v23 }
 0x23d   :  { %v1287_v0 = vpop.eup %1286  ;;  %v563_v49 = vadd.f32 1.0, %v1285_v45  ;;  %v576_v4 = vmul.f32 %v560_v54, %v448_v59  ;;  %v1113_v45 = vld [vmem:[%s1707_s7 + $0x8] sm:$0xff]  }
 0x23e   :  { %v565_v51 = vadd.f32 1.0, %v1287_v0  ;;  %v578_v10 = vmul.f32 %v562_v25, %v450_v29 }
 0x23f   :  { %v579_v53 = vmul.f32 %v563_v49, %v451_v48  ;;  %v1100_v49 = vunpack.c.l.bf16 %v1113_v45 }
 0x240   :  { %v581_v56 = vmul.f32 %v565_v51, %v453_v1  ;;  %v1101_v1 = vunpack.c.h.bf16 %v1113_v45 }
 0x241   :  { %v1289_v57 = vpop.eup %1288  ;;  %v591_v58 = vpack.c.bf16 %v579_v53, %v575_v52 }
 0x242   :  { %v564_v2 = vadd.f32 1.0, %v1289_v57  ;;  %v593_v61 = vpack.c.bf16 %v581_v56, %v577_v55 }
 0x244   :  { %v1291_v3 = vpop.eup %1290  ;;  %v580_v7 = vmul.f32 %v564_v2, %v452_v60 }
 0x245   :  { %v566_v12 = vadd.f32 1.0, %v1291_v3 }
 0x246   :  { %v592_v6 = vpack.c.bf16 %v580_v7, %v576_v4 }
 0x247   :  { %v582_v11 = vmul.f32 %v566_v12, %v454_v5 }
 0x248   :  { %891 = vmatprep.mubr.bf16.mxu0 %v592_v6 }
 0x249   :  { %v594_v13 = vpack.c.bf16 %v582_v11, %v578_v10  ;;  %892 = vmatmul.mubr.bf16.gmra.mrb[12].mxu0 %v591_v58 }
 0x24b   :  { %940 = vmatprep.mubr.bf16.mxu1 %v594_v13 }
 0x24c   :  { %941 = vmatmul.mubr.bf16.gmra.mrb[12].mxu1 %v593_v61 }
 0x30e   :  { %v1131_v18 = vpop.f32.mrb[8].mxu0 }
 0x30f   :  { %v1159_v36 = vpop.f32.mrb[8].mxu1  ;;  %v1132_v14 = vpop.f32.mrb[9].mxu0 }
 0x310   :  { %v1133_v15 = vadd.f32 %v1132_v14, %v1131_v18  ;;  %v1160_v16 = vpop.f32.mrb[9].mxu1  ;;  %v1134_v19 = vpop.f32.mrb[10].mxu0 }
 0x311   :  { %v1161_v20 = vadd.f32 %v1160_v16, %v1159_v36  ;;  %v1162_v22 = vpop.f32.mrb[10].mxu1  ;;  %v1135_v21 = vpop.f32.mrb[11].mxu0 }
 0x312   :  { %v1136_v26 = vadd.f32 %v1135_v21, %v1134_v19  ;;  %v1163_v27 = vpop.f32.mrb[11].mxu1 }
 0x313   :  { %v935_v30 = vadd.f32 %v1161_v20, %v1133_v15  ;;  %v1164_v31 = vadd.f32 %v1163_v27, %v1162_v22 }
 0x315   :  { %v971_v28 = vadd.f32 %v1077_v39, %v935_v30  ;;  %v938_v34 = vadd.f32 %v1164_v31, %v1136_v26 }
 0x317   :  { %v972_v8 = vadd.f32 %v1077_v39, %v938_v34  ;;  %v983_v35 = vadd.f32 %v1096_v33, %v971_v28 }
 0x319   :  { %v984_v32 = vadd.f32 %v1097_v62, %v972_v8 }
 0x31b   :  { %v1105_v63 = vpack.c.bf16 %v984_v32, %v983_v35 }
 0x31c   :  { %v1137_v37 = vpop.f32.mrb[12].mxu0 }
 0x31d   :  { %1106 = vst [vmem:[%s1708_s8] sm:$0xff] %v1105_v63   ;;  %v1138_v38 = vpop.f32.mrb[13].mxu0 }
 0x31e   :  { %v1139_v17 = vadd.f32 %v1138_v38, %v1137_v37  ;;  %v1140_v40 = vpop.f32.mrb[14].mxu0 }
 0x31f   :  { %v1165_v41 = vpop.f32.mrb[12].mxu1  ;;  %v1141_v42 = vpop.f32.mrb[15].mxu0 }
 0x320   :  { %v1166_v43 = vpop.f32.mrb[13].mxu1  ;;  %v1142_v9 = vadd.f32 %v1141_v42, %v1140_v40 }
 0x321   :  { %v1167_v24 = vadd.f32 %v1166_v43, %v1165_v41  ;;  %v1168_v44 = vpop.f32.mrb[14].mxu1 }
 0x322   :  { %v1169_v46 = vpop.f32.mrb[15].mxu1 }
 0x323   :  { %v943_v0 = vadd.f32 %v1167_v24, %v1139_v17  ;;  %v1170_v47 = vadd.f32 %v1169_v46, %v1168_v44 }
 0x325   :  { %v973_v48 = vadd.f32 %v1077_v39, %v943_v0  ;;  %v946_v50 = vadd.f32 %v1170_v47, %v1142_v9 }
 0x327   :  { %v974_v51 = vadd.f32 %v1077_v39, %v946_v50  ;;  %v985_v52 = vadd.f32 %v1100_v49, %v973_v48 }
 0x329   :  { %v986_v53 = vadd.f32 %v1101_v1, %v974_v51 }
 0x32b   :  { %v1110_v54 = vpack.c.bf16 %v986_v53, %v985_v52 }
 0x32d   :  { %1114 = vst [vmem:[%s1708_s8 + $0x8] sm:$0xff] %v1110_v54  }

// kernel: gpt_forward.10
= control target key start
LH: loop header
LB: loop body
LE: loop exit
PB: predicated region body
PF: predicated region fallthrough
CT: control target
= control target key end

     0   :  { %s1574_s12 = smov 0   ;;  %s1576_s13 = smov 0   ;;  %s1726_s0 = inlined_call_operand.vmem [shape: bf16[2,16,384], index: 0, kind: input, shape index: {}, may-alias: {0,1,2}]   ;;  %s1727_s1 = inlined_call_operand.vmem [shape: bf16[2,16,384], index: 1, kind: input, shape index: {}, may-alias: {0,1,2}]   ;;  %s1728_s2 = inlined_call_operand.vmem [shape: bf16[2,16,384], index: 2, kind: input, shape index: {}, may-alias: {0,1,2}]   ;;  %s1729_s3 = inlined_call_operand.vmem [shape: bf16[2,16,128], index: 3, kind: output, shape index: {}]  }
   0x1   :  { %s1578_s14 = smov 0   ;;  %s1580_s15 = smov 0  }
   0x2   :  { %s1582_s16 = smov 0  }
   0x3 LB: > { %s32_s17 = sadd.s32 1, %s1544_s15  ;;  %p48_p1 = scmp.ne.s32.totalorder %s1536_s13, %s1532_s12  ;;  %s1548_s16 = sphi %s1582_s16, %s13_s16   ;;  %s1544_s15 = sphi %s1580_s15, %s1734_s15   ;;  %s1540_s14 = sphi %s1578_s14, %s1733_s14   ;;  %s1536_s13 = sphi %s1576_s13, %s1732_s13   ;;  %s1532_s12 = sphi %s1574_s12, %s1731_s12  }
   0x4   : > { %p34_p0 = scmp.ge.s32.totalorder %s32_s17, 2  ;;  %p49_p2 = scmp.eq.s32.totalorder %s1548_s16, 0 }
   0x5   : > { %s41_s20 = sadd.s32 1, %s1536_s13  ;;  %p1361_p5 = scmp.ge.s32.totalorder %s1548_s16, 2 }
   0x6   : > { %s1736_s17 = smov (%p34_p0, %s32_s17), 0  ;;  %p1605_p3 = por %p49_p2, %p48_p1 }
   0x7   : > { %s36_s19 = ssub.s32 %s1544_s15, %s1736_s17  ;;  %166 = sbr.rel (%p1361_p5) target bundleno = 35 (0x23), region = 16 }
   0x8   : > { %p39_p4 = scmp.eq.s32.totalorder %s36_s19, 0 }
   0xa   : > { %s1613_s21 = scalar_select %p39_p4, %s1536_s13, %s41_s20  }
   0xe   : > { %169 = sbr.rel (!%p1605_p3) target bundleno = 21 (0x15), region = 20  ;;  %s171_s22 = sand.u32 (%p1605_p3), 1, %s1536_s13  }
   0xf   : > { %s1437_s23 = smul.u32 (%p1605_p3), 24, %s1544_s15  ;;  %s1362_s24 = sshll.u32 (%p1605_p3), %s171_s22, 3 }
  0x10   : > { %s173_s28 = scalar_lea.vmem (%p1605_p3), [#allocation5], %s1362_s24 }
  0x11   : > { %s179_s27 = scalar_lea.vmem (%p1605_p3), %s1726_s0, %s1437_s23 }
  0x12   : > { %v195_v0 = vld [vmem:[%s179_s27] sm:$0xf] (%p1605_p3)  ;;  %v197_v1 = vld [vmem:[%s179_s27 + $0xc] sm:$0xf] (%p1605_p3) }
  0x13   : > { %196 = vst [vmem:[%s173_s28] sm:$0xf] (%p1605_p3), %v195_v0  ;;  %198 = vst [vmem:[%s173_s28 + $0x4] sm:$0xf] (%p1605_p3), %v197_v1 }
  0x15 PF: > { %225 = sbr.rel (!%p1605_p3) target bundleno = 28 (0x1c), region = 61  ;;  %s227_s29 = sand.u32 (%p1605_p3), 1, %s1536_s13  }
  0x16   : > { %s1365_s30 = smul.u32 (%p1605_p3), 24, %s1544_s15  ;;  %s1364_s4 = sshll.u32 (%p1605_p3), %s227_s29, 3 }
  0x17   : > { %s229_s8 = scalar_lea.vmem (%p1605_p3), [#allocation6], %s1364_s4 }
  0x18   : > { %s1264_s7 = scalar_lea.vmem (%p1605_p3), %s1727_s1, %s1365_s30 }
  0x19   : > { %v1366_v2 = vld [vmem:[%s1264_s7 + $0x4] sm:$0xf] (%p1605_p3)  ;;  %v1367_v3 = vld [vmem:[%s1264_s7 + $0x10] sm:$0xf] (%p1605_p3) }
  0x1a   : > { %255 = vst [vmem:[%s229_s8] sm:$0xf] (%p1605_p3), %v1366_v2  ;;  %257 = vst [vmem:[%s229_s8 + $0x4] sm:$0xf] (%p1605_p3), %v1367_v3 }
  0x1c PF: > { %284 = sbr.rel (!%p1605_p3) target bundleno = 35 (0x23), region = 102  ;;  %s286_s9 = sand.u32 (%p1605_p3), 1, %s1536_s13  }
  0x1d   : > { %s1369_s10 = smul.u32 (%p1605_p3), 24, %s1544_s15  ;;  %s1368_s11 = sshll.u32 (%p1605_p3), %s286_s9, 3 }
  0x1e   : > { %s288_s23 = scalar_lea.vmem (%p1605_p3), [#allocation7], %s1368_s11 }
  0x1f   : > { %s1272_s22 = scalar_lea.vmem (%p1605_p3), %s1728_s2, %s1369_s10 }
  0x20   : > { %v1370_v4 = vld [vmem:[%s1272_s22 + $0x8] sm:$0xf] (%p1605_p3)  ;;  %v1371_v5 = vld [vmem:[%s1272_s22 + $0x14] sm:$0xf] (%p1605_p3) }
  0x21   : > { %314 = vst [vmem:[%s288_s23] sm:$0xf] (%p1605_p3), %v1370_v4  ;;  %316 = vst [vmem:[%s288_s23 + $0x4] sm:$0xf] (%p1605_p3), %v1371_v5 }
  0x23 PF: > { %p1372_p6 = scmp.ge.s32.totalorder %s1548_s16, 1  ;;  %p342_p7 = scmp.lt.s32.totalorder %s1548_s16, 3 }
  0x25   : > { %p343_p8 = pnand %p1372_p6, %p342_p7 }
  0x26   : > { %s349_s18 = sand.u32 (!%p343_p8), 1, %s1532_s12   ;;  %vm428_vm0 = vcmask (!%p343_p8), 523264   ;;  %v1550_v6 = vmov (!%p343_p8), 0.0   ;;  %vm1551_vm1 = vmmov (!%p343_p8), 0   ;;  %v1552_v15 = vmov (!%p343_p8), 0   ;;  %s1553_s26 = smov (!%p343_p8), 64  }
  0x27   : > { %346 = sbr.rel (%p343_p8) target bundleno = 1468 (0x5bc), region = 143  ;;  %1413 = vmatprep.subr.bf16.mxu0 (!%p343_p8), %v1550_v6  ;;  %s1641_s24 = sshll.u32 (!%p343_p8), %s349_s18, 3  ;;  %429 = vst.msk [vmem:[#allocation4] sm:$0xff] (!%p343_p8), %vm428_vm0, %v1550_v6  ;;  %430 = vst.msk [vmem:[#allocation4 + $0x8] sm:$0xff] (!%p343_p8), %vm428_vm0, %v1550_v6  ;;  %1415 = vmatprep.mubr.msk.bf16.mxu0 (!%p343_p8), %vm1551_vm1, %v1550_v6  ;;  %v803_v16 = vlaneseq (!%p343_p8)  ;;  %vm867_vm3 = vcmask (!%p343_p8), 130048   ;;  %vm1183_vm5 = vcmask (!%p343_p8), 519168  }
  0x28   : > { %431 = vst.msk [vmem:[#allocation4 + $0x10] sm:$0xff] (!%p343_p8), %vm428_vm0, %v1550_v6  ;;  %432 = vst.msk [vmem:[#allocation4 + $0x18] sm:$0xff] (!%p343_p8), %vm428_vm0, %v1550_v6  ;;  %1419 = vmatprep.subr.bf16.mxu1 (!%p343_p8), %v1550_v6  ;;  %1421 = vmatprep.mubr.msk.bf16.mxu1 (!%p343_p8), %vm1551_vm1, %v1550_v6  ;;  %s351_s12 = scalar_lea.vmem (!%p343_p8), [#allocation5], %s1641_s24  ;;  %s358_s25 = scalar_lea.vmem (!%p343_p8), [#allocation6], %s1641_s24  ;;  %vm1218_vm6 = vcmask (!%p343_p8), 1043968  }
  0x29   : > { %v1402_v7 = vld [vmem:[%s351_s12] sm:$0xff] (!%p343_p8)   ;;  %v1484_v8 = vld [vmem:[%s358_s25] sm:$0xff] (!%p343_p8)   ;;  %1482 = vset.pattern.permute.xlu1 (!%p343_p8), %v1552_v15  ;;  %1483 = vset.pattern.permute.xlu0 (!%p343_p8), %v1552_v15  ;;  %v804_v17 = vshrl.u32 (!%p343_p8), %v803_v16, 7  ;;  %v807_v18 = vand.u32 (!%p343_p8), 127, %v803_v16  ;;  %s365_s27 = scalar_lea.vmem (!%p343_p8), [#allocation7], %s1641_s24  ;;  %p406_p9 = scmp.lt.s32.totalorder (!%p343_p8), %s1540_s14, 1 }
  0x2a   : > { %v1403_v9 = vunpack.c.l.bf16 (!%p343_p8), %v1402_v7  ;;  %v1404_v10 = vunpack.c.h.bf16 (!%p343_p8), %v1402_v7  ;;  %v820_v11 = vsel (!%p343_p8), %vm428_vm0, %v1484_v8, 0  ;;  %v1485_v30 = vld [vmem:[%s365_s27] sm:$0xff] (!%p343_p8)  }
  0x2b   : > { %1414 = vmatpush3.bf16.xpose.msra.mxu0 (!%p343_p8), %v820_v11  ;;  %v805_v19 = vadd.s32 (!%p343_p8), 8, %v804_v17  ;;  %vm808_vm2 = vcmp.le.s32.totalorder (!%p343_p8), %v807_v18, %v804_v17  ;;  %1420 = vmatpush3.bf16.msra.mxu1 (!%p343_p8), %v1485_v30 }
  0x2c   : > { %v796_v12 = vmul.f32 (!%p343_p8), 0.125, %v1403_v9  ;;  %v797_v13 = vmul.f32 (!%p343_p8), 0.125, %v1404_v10  ;;  %1431 = vmatprep.subr.bf16.mxu0 (!%p343_p8), %v1550_v6  ;;  %1425 = vmatprep.subr.bf16.mxu1 (!%p343_p8), %v1550_v6 }
  0x2d   : > { %vm809_vm4 = vcmp.le.s32.totalorder (!%p343_p8), %v807_v18, %v805_v19 }
  0x2e   : > { %v798_v14 = vpack.c.bf16 %v797_v13, %v796_v12  ;;  %s1738_s14 = smov (!%p406_p9, %s1540_s14), 1 }
  0x2f   : > { %s1396_s28 = sshll.u32 %s1738_s14, 3 }
  0x30   : > { %s413_s4 = scalar_lea.vmem %s1729_s3, %s1396_s28 }
  0x32   : > { %1416 = vmatmul.mubr.msk.bf16.vlgmr.msra.gmra.mrb[0].mxu0 %vm428_vm0, %v798_v14 }
  0x33   : > { %1433 = vmatprep.mubr.msk.bf16.mxu0 %vm1551_vm1, %v1550_v6 }
 0x105   : > { %v856_v20 = vpop.f32.mrb[0].mxu0 }
 0x106   : > { %v863_v21 = vsel %vm808_vm2, %v856_v20, -1e+30  ;;  %v1417_v22 = vpop.f32.mrb[1].mxu0 }
 0x107   : > { %v859_v23 = vpop.f32.mrb[2].mxu0  ;;  %v868_v24 = vsel %vm867_vm3, %v863_v21, -inf }
 0x108   : > { %v864_v25 = vsel %vm809_vm4, %v859_v23, -1e+30  ;;  %869 = vmax.xlane.f32.xlu0 %v868_v24  ;;  %v1418_v26 = vpop.f32.mrb[3].mxu0 }
 0x109   : > { %v871_v27 = vsel %vm867_vm3, %v864_v25, -inf }
 0x10c   : > { %872 = vmax.xlane.f32.xlu0 %v871_v27 }
 0x122   : > { %986 = vrot.lane.b32.xlu0 %v1484_v8, %s1553_s26 }
 0x195   : > { %v1668_v28 = vpop.xlane.xlu0 %869 }
 0x196   : > { %884 = vperm.xlu1 %1482, %v1668_v28   ;;  %v876_v13 = vsub.f32 -inf, %v1668_v28 }
 0x199   : > { %v1671_v29 = vpop.xlane.xlu0 %872 }
 0x19a   : > { %889 = vperm.xlu1 %1482, %v1671_v29   ;;  %v877_v15 = vsub.f32 -inf, %v1671_v29 }
 0x19c   : > { %v880_v16 = vmul.f32 1.442695, %v877_v15 }
 0x19d   : > { %v987_v37 = vpop.permute.xlu0 %986 }
 0x19e   : > { %984 = vrot.lane.b32.xlu1 %v798_v14, %s1553_s26  ;;  %v992_v40 = vsel %vm428_vm0, %v987_v37, 0  ;;  %v878_v14 = vmul.f32 1.442695, %v876_v13  ;;  %v1089_v37 = vld [vmem:[#allocation4 + $0x18] sm:$0xff] }
 0x215   : > { %v885_v31 = vpop.permute.xlu1 %884 }
 0x216   : > { %v892_v32 = vsub.f32 %v863_v21, %v885_v31 }
 0x218   : > { %v894_v33 = vmul.f32 1.442695, %v892_v32 }
 0x219   : > { %v890_v34 = vpop.permute.xlu1 %889 }
 0x21a   : > { %v893_v35 = vsub.f32 %v864_v25, %v890_v34  ;;  %1486 = vpow2.f32 %v894_v33 }
 0x21c   : > { %v896_v36 = vmul.f32 1.442695, %v893_v35 }
 0x21d   : > { %v985_v42 = vpop.permute.xlu1 %984 }
 0x21e   : > { %1488 = vpow2.f32 %v896_v36  ;;  %v1088_v36 = vld [vmem:[#allocation4 + $0x10] sm:$0xff] }
 0x224   : > { %v1487_v38 = vpop.eup %1486 }
 0x225   : > { %v902_v5 = vsel %vm867_vm3, %v1487_v38, 0.0 }
 0x228   : > { %v1489_v39 = vpop.eup %1488 }
 0x229   : > { %v928_v41 = vpack.c.bf16 %v1489_v39, %v1487_v38  ;;  %v905_v7 = vsel %vm867_vm3, %v1489_v39, 0.0 }
 0x22b   : > { %1422 = vmatmul.mubr.msk.bf16.vlgmr.msra.gmra.mrb[0].mxu1 %vm867_vm3, %v928_v41 }
 0x22c   : > { %1426 = vmatpush3.bf16.xpose.msra.mxu1 %v992_v40  ;;  %1427 = vmatprep.mubr.msk.bf16.mxu1 %vm1551_vm1, %v1550_v6 }
 0x233   : > { %1428 = vmatmul.mubr.msk.bf16.vlgmr.msra.gmra.mrb[4].mxu1 %vm428_vm0, %v985_v42 }
 0x2fe   : > { %v1682_v43 = vpop.f32.mrb[0].mxu1 }
 0x2ff   : > { %v1423_v44 = vpop.f32.mrb[1].mxu1 }
 0x300   : > { %v1684_v45 = vpop.f32.mrb[2].mxu1 }
 0x301   : > { %v1424_v46 = vpop.f32.mrb[3].mxu1 }
 0x306   : > { %v1028_v47 = vpop.f32.mrb[4].mxu1 }
 0x307   : > { %v1035_v48 = vsel %vm808_vm2, %v1028_v47, -1e+30  ;;  %v1429_v49 = vpop.f32.mrb[5].mxu1 }
 0x308   : > { %v1031_v50 = vpop.f32.mrb[6].mxu1  ;;  %v1040_v51 = vsel %vm867_vm3, %v1035_v48, -inf }
 0x309   : > { %v1036_v52 = vsel %vm809_vm4, %v1031_v50, -1e+30  ;;  %1041 = vmax.xlane.f32.xlu1 %v1040_v51  ;;  %v1430_v53 = vpop.f32.mrb[7].mxu1 }
 0x30a   : > { %v1043_v54 = vsel %vm867_vm3, %v1036_v52, -inf }
 0x30b   : > { %1044 = vmax.xlane.f32.xlu0 %v1043_v54  ;;  %v914_v54 = vld [vmem:[#allocation4] sm:$0xff] }
 0x396   : > { %v1042_v55 = vpop.xlane.xlu1 %1041 }
 0x397   : > { %1056 = vperm.xlu1 %1482, %v1042_v55   ;;  %v1048_v6 = vsub.f32 -inf, %v1042_v55 }
 0x398   : > { %v1045_v56 = vpop.xlane.xlu0 %1044 }
 0x399   : > { %1061 = vperm.xlu0 %1483, %v1045_v56   ;;  %v1050_v8 = vmul.f32 1.442695, %v1048_v6  ;;  %v1049_v9 = vsub.f32 -inf, %v1045_v56 }
 0x39b   : > { %1103 = vrot.lane.b32.xlu1 %v1485_v30, %s1553_s26  ;;  %v1052_v10 = vmul.f32 1.442695, %v1049_v9 }
 0x416   : > { %v1057_v57 = vpop.permute.xlu1 %1056 }
 0x417   : > { %v1064_v58 = vsub.f32 %v1035_v48, %v1057_v57 }
 0x418   : > { %v1062_v59 = vpop.permute.xlu0 %1061 }
 0x419   : > { %v1066_v60 = vmul.f32 1.442695, %v1064_v58  ;;  %v1065_v61 = vsub.f32 %v1036_v52, %v1062_v59 }
 0x41a   : > { %v1104_v62 = vpop.permute.xlu1 %1103 }
 0x41b   : > { %1490 = vpow2.f32 %v1066_v60  ;;  %v1068_v63 = vmul.f32 1.442695, %v1065_v61  ;;  %1432 = vmatpush3.bf16.msra.mxu0 %v1104_v62  ;;  %v915_v60 = vld [vmem:[#allocation4 + $0x8] sm:$0xff] }
 0x41d   : > { %1492 = vpow2.f32 %v1068_v63 }
 0x41e   : > { %1494 = vpow2.f32 %v1050_v8 }
 0x41f   : > { %1496 = vpow2.f32 %v1052_v10 }
 0x420   : > { %1498 = vpow2.f32 %v878_v14 }
 0x421   : > { %1500 = vpow2.f32 %v880_v16 }
 0x425   : > { %v1491_v0 = vpop.eup %1490 }
 0x426   : > { %v1075_v1 = vsel %vm867_vm3, %v1491_v0, 0.0 }
 0x427   : > { %v1493_v2 = vpop.eup %1492  ;;  %1076 = vadd.xlane.f32.xlu1 %v1075_v1 }
 0x428   : > { %v1078_v3 = vsel %vm867_vm3, %v1493_v2, 0.0  ;;  %v1102_v4 = vpack.c.bf16 %v1493_v2, %v1491_v0  ;;  %v1495_v11 = vpop.eup %1494 }
 0x429   : > { %1079 = vadd.xlane.f32.xlu0 %v1078_v3  ;;  %v1497_v12 = vpop.eup %1496  ;;  %v1073_v17 = vmul.f32 0.0, %v1495_v11 }
 0x42a   : > { %1434 = vmatmul.mubr.msk.bf16.vlgmr.msra.gmra.mrb[4].mxu0 %vm867_vm3, %v1102_v4  ;;  %v1074_v20 = vmul.f32 0.0, %v1497_v12  ;;  %v1499_v23 = vpop.eup %1498 }
 0x42b   : > { %903 = vadd.xlane.f32.xlu1 %v902_v5  ;;  %v900_v25 = vmul.f32 0.0, %v1499_v23  ;;  %v1501_v26 = vpop.eup %1500 }
 0x42c   : > { %v901_v31 = vmul.f32 0.0, %v1501_v26 }
 0x42f   : > { %906 = vadd.xlane.f32.xlu1 %v905_v7 }
 0x440   : > { %1092 = vperm.xlu1 %1482, %v1495_v11  }
 0x444   : > { %1097 = vperm.xlu1 %1482, %v1497_v12  }
 0x4b4   : > { %v1077_v18 = vpop.xlane.xlu1 %1076 }
 0x4b5   : > { %v1081_v19 = vadd.f32 %v1077_v18, %v1073_v17 }
 0x4b6   : > { %v1080_v21 = vpop.xlane.xlu0 %1079 }
 0x4b7   : > { %1502 = vrcp.f32 %v1081_v19  ;;  %v1082_v22 = vadd.f32 %v1080_v21, %v1074_v20 }
 0x4b8   : > { %v904_v24 = vpop.xlane.xlu1 %903 }
 0x4b9   : > { %1504 = vrcp.f32 %v1082_v22  ;;  %v908_v27 = vadd.f32 %v904_v24, %v900_v25 }
 0x4bb   : > { %1506 = vrcp.f32 %v908_v27 }
 0x4bc   : > { %v907_v28 = vpop.xlane.xlu1 %906 }
 0x4bd   : > { %v909_v32 = vadd.f32 %v907_v28, %v901_v31 }
 0x4bf   : > { %1508 = vrcp.f32 %v909_v32 }
 0x4c0   : > { %v1093_v35 = vpop.permute.xlu1 %1092 }
 0x4c1   : > { %v1503_v30 = vpop.eup %1502  ;;  %v1100_v39 = vmul.f32 %v1093_v35, %v1088_v36 }
 0x4c2   : > { %1196 = vperm.xlu1 %1482, %v1503_v30  }
 0x4c3   : > { %v1505_v29 = vpop.eup %1504 }
 0x4c4   : > { %1201 = vperm.xlu0 %1483, %v1505_v29   ;;  %v1098_v38 = vpop.permute.xlu1 %1097 }
 0x4c5   : > { %v1507_v33 = vpop.eup %1506  ;;  %v1101_v41 = vmul.f32 %v1098_v38, %v1089_v37 }
 0x4c6   : > { %918 = vperm.xlu1 %1482, %v1499_v23  }
 0x4c9   : > { %v1509_v34 = vpop.eup %1508 }
 0x4ca   : > { %923 = vperm.xlu1 %1482, %v1501_v26  }
 0x4ce   : > { %1165 = vperm.xlu1 %1482, %v1507_v33  }
 0x4d2   : > { %1170 = vperm.xlu1 %1482, %v1509_v34  }
 0x4fd   : > { %v1143_v40 = vpop.f32.mrb[4].mxu0 }
 0x4fe   : > { %v1150_v42 = vadd.f32 %v1143_v40, %v1100_v39  ;;  %v1435_v44 = vpop.f32.mrb[5].mxu0 }
 0x4ff   : > { %v1146_v46 = vpop.f32.mrb[6].mxu0 }
 0x500   : > { %1152 = vst.msk [vmem:[#allocation4 + $0x10] sm:$0xff] %vm428_vm0, %v1150_v42  ;;  %v1151_v47 = vadd.f32 %v1146_v46, %v1101_v41  ;;  %v1436_v48 = vpop.f32.mrb[7].mxu0 }
 0x502   : > { %1153 = vst.msk [vmem:[#allocation4 + $0x18] sm:$0xff] %vm428_vm0, %v1151_v47 }
 0x507   : > { %v1192_v50 = vld [vmem:[#allocation4 + $0x10] sm:$0xff] }
 0x509   : > { %v1193_v53 = vld [vmem:[#allocation4 + $0x18] sm:$0xff] }
 0x541   : > { %v1197_v49 = vpop.permute.xlu1 %1196 }
 0x542   : > { %v1204_v51 = vmul.f32 %v1197_v49, %v1192_v50 }
 0x543   : > { %v1202_v52 = vpop.permute.xlu0 %1201 }
 0x544   : > { %v1399_v55 = vpack.c.bf16 %v1204_v51, %v1204_v51  ;;  %v1205_v56 = vmul.f32 %v1202_v52, %v1193_v53 }
 0x545   : > { %v919_v57 = vpop.permute.xlu1 %918 }
 0x546   : > { %v1400_v58 = vpack.c.bf16 %v1205_v56, %v1205_v56  ;;  %v926_v59 = vmul.f32 %v919_v57, %v914_v54  ;;  %1212 = vrot.lane.b32.xlu1 %v1399_v55, %s1553_s26 }
 0x548   : > { %v979_v61 = vadd.f32 %v1682_v43, %v926_v59  ;;  %1214 = vrot.lane.b32.xlu0 %v1400_v58, %s1553_s26 }
 0x549   : > { %v924_v62 = vpop.permute.xlu1 %923 }
 0x54a   : > { %981 = vst.msk [vmem:[#allocation4] sm:$0xff] %vm428_vm0, %v979_v61  ;;  %v927_v63 = vmul.f32 %v924_v62, %v915_v60 }
 0x54c   : > { %v980_v0 = vadd.f32 %v1684_v45, %v927_v63 }
 0x54d   : > { %v1166_v1 = vpop.permute.xlu1 %1165 }
 0x54e   : > { %982 = vst.msk [vmem:[#allocation4 + $0x8] sm:$0xff] %vm428_vm0, %v980_v0 }
 0x551   : > { %v1161_v2 = vld [vmem:[#allocation4] sm:$0xff]  ;;  %v1171_v5 = vpop.permute.xlu1 %1170 }
 0x552   : > { %v1173_v3 = vmul.f32 %v1166_v1, %v1161_v2 }
 0x554   : > { %v1397_v43 = vpack.c.bf16 %v1173_v3, %v1173_v3 }
 0x555   : > { %v1162_v4 = vld [vmem:[#allocation4 + $0x8] sm:$0xff] }
 0x556   : > { %1184 = vst.msk [vmem:[%s413_s4] sm:$0xf] %vm1183_vm5, %v1397_v43  ;;  %v1174_v6 = vmul.f32 %v1171_v5, %v1162_v4 }
 0x558   : > { %v1398_v7 = vpack.c.bf16 %v1174_v6, %v1174_v6 }
 0x55a   : > { %1185 = vst.msk [vmem:[%s413_s4 + $0x4] sm:$0xf] %vm1183_vm5, %v1398_v7 }
 0x5b8   : > { %v1213_v45 = vpop.permute.xlu1 %1212 }
 0x5b9   : > { %1219 = vst.msk [vmem:[%s413_s4] sm:$0xf] %vm1218_vm6, %v1213_v45 }
 0x5ba   : > { %v1215_v8 = vpop.permute.xlu0 %1214 }
 0x5bb   : > { %1220 = vst.msk [vmem:[%s413_s4 + $0x4] sm:$0xf] %vm1218_vm6, %v1215_v8 }
 0x5bc PF: > { %s13_s16 = sadd.s32 1, %s1548_s16   ;;  %s1731_s12 = smov %s1536_s13 }
 0x5bd   : > { %p10_p10 = scmp.ge.s32.totalorder %s13_s16, 4   ;;  %s1732_s13 = smov %s1613_s21 }
 0x5be   : > { %s1733_s14 = smov %s1544_s15  ;;  %s1734_s15 = smov %s1736_s17 }
 0x5bf   :  { %12 = sbr.rel (!%p10_p10) target bundleno = 3 (0x3), region = 230 }

// kernel: gpt_forward.17
= control target key start
LH: loop header
LB: loop body
LE: loop exit
PB: predicated region body
PF: predicated region fallthrough
CT: control target
= control target key end

     0   :  { %s440_s0 = inlined_call_operand.vmem [shape: bf16[32,128], index: 0, kind: input, shape index: {}]   ;;  %s441_s1 = inlined_call_operand.vmem [shape: f32[1,128], index: 1, kind: input, shape index: {}]   ;;  %s442_s2 = inlined_call_operand.vmem [shape: f32[1,128], index: 2, kind: input, shape index: {}]   ;;  %s443_s3 = inlined_call_operand.vmem [shape: bf16[128,128], index: 3, kind: input, shape index: {}]   ;;  %s444_s4 = inlined_call_operand.hbm [shape: bf16[32,128], index: 4, kind: output, shape index: {}]  }
   0x1   :  { %v272_v0 = vld [vmem:[%s440_s0] sm:$0xff]   ;;  %v289_v1 = vld [vmem:[%s440_s0 + $0x8] sm:$0xff]  }
   0x2   :  { %v273_v2 = vunpack.c.l.bf16 %v272_v0  ;;  %v277_v3 = vunpack.c.l.bf16 %v289_v1  ;;  %v274_v4 = vunpack.c.h.bf16 %v272_v0  ;;  %v278_v5 = vunpack.c.h.bf16 %v289_v1 }
   0x4   :  { %33 = vadd.xlane.f32.xlu0 %v273_v2  ;;  %37 = vadd.xlane.f32.xlu1 %v277_v3 }
   0x5   :  { %9 = vsyncpa [#allocation4], 0  ;;  %v324_v6 = vld [vmem:[%s443_s3] sm:$0xff]   ;;  %v325_v7 = vld [vmem:[%s443_s3 + $0x8] sm:$0xff]  }
   0x6   :  { %301 = vmatprep.subr.bf16.mxu0 %v324_v6  ;;  %v326_v8 = vld [vmem:[%s443_s3 + $0x10] sm:$0xff]   ;;  %v327_v9 = vld [vmem:[%s443_s3 + $0x18] sm:$0xff]   ;;  %v328_v10 = vld [vmem:[%s443_s3 + $0x20] sm:$0xff]  }
   0x7   :  { %302 = vmatpush3.bf16.xpose.msra.mxu0 %v324_v6  ;;  %v329_v27 = vld [vmem:[%s443_s3 + $0x28] sm:$0xff]   ;;  %v330_v28 = vld [vmem:[%s443_s3 + $0x30] sm:$0xff]   ;;  %v331_v29 = vld [vmem:[%s443_s3 + $0x38] sm:$0xff]  }
   0x8   :  { %35 = vadd.xlane.f32.xlu0 %v274_v4  ;;  %39 = vadd.xlane.f32.xlu1 %v278_v5  ;;  %v253_v44 = vld [vmem:[%s441_s1] ss:$0 sm:$0xff]  ;;  %s364_s1 = smov [#allocation3]  }
   0x9   :  { %303 = vmatprep.subr.bf16.mxu0 %v325_v7  ;;  %v254_v49 = vld [vmem:[%s442_s2] ss:$0 sm:$0xff]  ;;  %s242_s11 = sshll.u32 %s364_s1, 4  ;;  %s243_s11 = int_to_ptr.vmem [resolvable:$true] %s242_s11 }
   0xa   :  { %s340_s2 = scalar_lea.vmem %s243_s11, 256  ;;  %p345_p1 = scmp.lt.s32.totalorder %s243_s11, %s243_s11 }
   0xb   :  { %p341_p0 = scmp.ne.s32.totalorder %s243_s11, %s340_s2  ;;  %p346_p2 = scmp.lt.s32.totalorder %s340_s2, %s340_s2 }
   0xd   :  { %p347_p3 = por %p346_p2, %p345_p1 }
   0xf   :  { %304 = vmatpush3.bf16.xpose.msra.mxu0 %v325_v7  ;;  %p348_p4 = pnand %p347_p3, %p341_p0 }
  0x10   :  { %305 = vmatprep.subr.bf16.mxu0 %v326_v8 }
  0x17   :  { %306 = vmatpush3.bf16.xpose.msra.mxu0 %v326_v8 }
  0x18   :  { %307 = vmatprep.subr.bf16.mxu0 %v327_v9 }
  0x1f   :  { %308 = vmatpush3.bf16.xpose.msra.mxu0 %v327_v9 }
  0x20   :  { %309 = vmatprep.subr.bf16.mxu0 %v328_v10 }
  0x27   :  { %310 = vmatpush3.bf16.xpose.msra.mxu0 %v328_v10 }
  0x28   :  { %311 = vmatprep.subr.bf16.mxu0 %v329_v27 }
  0x2f   :  { %312 = vmatpush3.bf16.xpose.msra.mxu0 %v329_v27 }
  0x30   :  { %313 = vmatprep.subr.bf16.mxu0 %v330_v28 }
  0x37   :  { %314 = vmatpush3.bf16.xpose.msra.mxu0 %v330_v28 }
  0x38   :  { %315 = vmatprep.subr.bf16.mxu0 %v331_v29 }
  0x3f   :  { %316 = vmatpush3.bf16.xpose.msra.mxu0 %v331_v29 }
  0x91   :  { %v34_v11 = vpop.xlane.xlu0 %33  ;;  %v38_v12 = vpop.xlane.xlu1 %37 }
  0x92   :  { %v42_v13 = vmul.f32 0.0078125, %v34_v11  ;;  %v44_v14 = vmul.f32 0.0078125, %v38_v12 }
  0x94   :  { %v46_v15 = vsub.f32 %v273_v2, %v42_v13  ;;  %v48_v16 = vsub.f32 %v277_v3, %v44_v14 }
  0x95   :  { %v36_v17 = vpop.xlane.xlu0 %35  ;;  %v40_v18 = vpop.xlane.xlu1 %39 }
  0x96   :  { %v43_v19 = vmul.f32 0.0078125, %v36_v17  ;;  %v50_v20 = vmul.f32 %v46_v15, %v46_v15  ;;  %v45_v21 = vmul.f32 0.0078125, %v40_v18  ;;  %v52_v24 = vmul.f32 %v48_v16, %v48_v16 }
  0x98   :  { %v47_v22 = vsub.f32 %v274_v4, %v43_v19  ;;  %54 = vadd.xlane.f32.xlu0 %v50_v20  ;;  %v49_v23 = vsub.f32 %v278_v5, %v45_v21 }
  0x9a   :  { %v51_v25 = vmul.f32 %v47_v22, %v47_v22  ;;  %v53_v26 = vmul.f32 %v49_v23, %v49_v23 }
  0x9c   :  { %58 = vadd.xlane.f32.xlu0 %v52_v24  ;;  %56 = vadd.xlane.f32.xlu1 %v51_v25 }
  0xa0   :  { %60 = vadd.xlane.f32.xlu1 %v53_v26 }
 0x125   :  { %v55_v30 = vpop.xlane.xlu0 %54 }
 0x126   :  { %v62_v31 = vmul.f32 0.0078125, %v55_v30 }
 0x128   :  { %v66_v32 = vadd.f32 1e-05, %v62_v31 }
 0x129   :  { %v57_v33 = vpop.xlane.xlu1 %56  ;;  %v59_v34 = vpop.xlane.xlu0 %58 }
 0x12a   :  { %332 = vrsqrt.f32 %v66_v32  ;;  %v63_v35 = vmul.f32 0.0078125, %v57_v33  ;;  %v64_v36 = vmul.f32 0.0078125, %v59_v34 }
 0x12c   :  { %v67_v37 = vadd.f32 1e-05, %v63_v35  ;;  %v68_v38 = vadd.f32 1e-05, %v64_v36 }
 0x12d   :  { %v61_v39 = vpop.xlane.xlu1 %60 }
 0x12e   :  { %334 = vrsqrt.f32 %v67_v37  ;;  %v65_v40 = vmul.f32 0.0078125, %v61_v39 }
 0x12f   :  { %336 = vrsqrt.f32 %v68_v38 }
 0x130   :  { %v69_v41 = vadd.f32 1e-05, %v65_v40 }
 0x132   :  { %338 = vrsqrt.f32 %v69_v41 }
 0x134   :  { %v333_v42 = vpop.eup %332 }
 0x135   :  { %v74_v43 = vmul.f32 %v333_v42, %v46_v15 }
 0x137   :  { %v84_v48 = vmul.f32 %v253_v44, %v74_v43 }
 0x138   :  { %v335_v45 = vpop.eup %334 }
 0x139   :  { %v337_v46 = vpop.eup %336  ;;  %v75_v47 = vmul.f32 %v335_v45, %v47_v22  ;;  %v94_v53 = vadd.f32 %v254_v49, %v84_v48 }
 0x13a   :  { %v76_v50 = vmul.f32 %v337_v46, %v48_v16 }
 0x13b   :  { %v85_v51 = vmul.f32 %v253_v44, %v75_v47 }
 0x13c   :  { %v339_v52 = vpop.eup %338  ;;  %v86_v56 = vmul.f32 %v253_v44, %v76_v50 }
 0x13d   :  { %v95_v54 = vadd.f32 %v254_v49, %v85_v51  ;;  %v77_v55 = vmul.f32 %v339_v52, %v49_v23 }
 0x13e   :  { %v96_v59 = vadd.f32 %v254_v49, %v86_v56 }
 0x13f   :  { %v98_v57 = vpack.c.bf16 %v95_v54, %v94_v53  ;;  %v87_v58 = vmul.f32 %v253_v44, %v77_v55 }
 0x141   :  { %317 = vmatprep.mubr.bf16.mxu0 %v98_v57  ;;  %v97_v60 = vadd.f32 %v254_v49, %v87_v58 }
 0x143   :  { %v99_v61 = vpack.c.bf16 %v97_v60, %v96_v59 }
 0x145   :  { %318 = vmatmul.mubr.bf16.vlgmr.msra.gmra.mrb[0].mxu0 %v99_v61 }
 0x218   :  { %v319_v62 = vpop.f32.mrb[0].mxu0 }
 0x219   :  { %v202_v63 = vpop.f32.mrb[1].mxu0 }
 0x21a   :  { %v320_v0 = vpop.f32.mrb[2].mxu0 }
 0x21b   :  { %v287_v1 = vpack.c.bf16 %v320_v0, %v319_v62  ;;  %v205_v2 = vpop.f32.mrb[3].mxu0 }
 0x21c   :  { %v282_v3 = vpack.c.bf16 %v205_v2, %v202_v63 }
 0x21d   :  { %290 = vst [vmem:[#allocation3 + $0x8] sm:$0xff] %v287_v1  }
 0x21e   :  { %283 = vst [vmem:[#allocation3] sm:$0xff] %v282_v3  }
 0x21f   :  { %351 = shalt.err (!%p348_p4)
}
 0x220   :  { %s352_s14 = scalar_lea.hbm %s444_s4, 256 }
 0x221   :  { %p353_p5 = scmp.ne.s32.totalorder %s444_s4, %s352_s14  ;;  %p356_p6 = scmp.lt.u32.totalorder %s352_s14, %s444_s4 }
 0x223   :  { %p358_p7 = pnand %p356_p6, %p353_p5 }
 0x225   :  { %361 = shalt.err (!%p358_p7)
}
 0x226   :  { %s365_s19 = smov 64   ;;  %s366_s20 = smov 4  }
 0x227   :  { %248 = dma.vmem_to_hbm [thread:$0]  %s243_s11, 256, %s444_s4, [#allocation4], %s365_s19, %s365_s19, %s366_s20  }
 0x228   :  { %362 = dma.done.wait [#allocation4], 256  }
 0x229   :  { %363 = vsyncadd [#allocation4], 4294967040 }
 0x22a   :  { %252 = vsyncpa [#allocation4], 1 }

</bundles_post_ra>
